<compile_context>
chip_gen: v5e
topology: v5e:2x2
jax: 0.10.0
libtpu: 0.0.40
codegen_flags: <defaults>
</compile_context>

<pallas_src>
import functools
import math

import jax
import jax.numpy as jnp
from jax.experimental import pallas as pl
from jax.experimental.pallas import tpu as pltpu


# -----------------------------------------------------------------------------
# small helpers
# -----------------------------------------------------------------------------
def _rup(n, m=128):
    return ((n + m - 1) // m) * m


def _pad_axis(x, axis, mult):
    n = x.shape[axis]
    p = (-n) % mult
    if p == 0:
        return x
    pads = [(0, 0)] * x.ndim
    pads[axis] = (0, p)
    return jnp.pad(x, pads)


# -----------------------------------------------------------------------------
# Pallas kernels
# -----------------------------------------------------------------------------
def _chain_kernel(*refs, n_steps, acts, emits):
    """refs = [A, W0, b0, ..., W_{S-1}, b_{S-1}, out_0, ..., out_{E-1}].

    One grid step == one "level" (sibling module).  Computes
        h <- act_s(h @ W_s + b_s)   for s = 0 .. S-1
    with every intermediate resident in VMEM/vregs; the f32 result of each
    step listed in `emits` is written lane-dense to its output block.
    """
    out_refs = refs[1 + 2 * n_steps:]
    h = refs[0][0]                          # (Mp, K0p) bf16
    oi = 0
    for s in range(n_steps):
        w = refs[1 + 2 * s][0]              # (Kp, Np) bf16
        b = refs[2 + 2 * s][0]              # (1, Np) f32
        acc = jnp.dot(h, w, preferred_element_type=jnp.float32) + b
        act = acts[s]
        if act in ("relu", "relu_sigmoid"):
            acc = jnp.maximum(acc, 0.0)
        if act in ("sigmoid", "relu_sigmoid"):
            acc = 1.0 / (1.0 + jnp.exp(-acc))   # EUP exp, exact reciprocal
        if s in emits:
            out_refs[oi][0] = acc
            oi += 1
        if s + 1 < n_steps:
            h = acc.astype(jnp.bfloat16)    # next MXU feed in bf16


def _avgmax_kernel(x_ref, o_ref):
    x = x_ref[...]                                      # (C, Mp): pixels on lanes
    mean = jnp.mean(x, axis=0, keepdims=True)
    mx = jnp.max(x, axis=0, keepdims=True)
    o_ref[...] = jnp.concatenate([mean, mx], axis=0)    # (2, Mp), lane-dense


# -----------------------------------------------------------------------------
# pallas_call builders (callables cached by shape signature)
# -----------------------------------------------------------------------------
_PALLAS_CACHE = {}


def _chain_call(kernel, operands, out_shapes, n_lvl, cost, cache_key):
    if cache_key not in _PALLAS_CACHE:
        _PALLAS_CACHE[cache_key] = pl.pallas_call(
            kernel,
            out_shape=list(out_shapes),
            grid=(n_lvl,),
            in_specs=[pl.BlockSpec((1,) + op.shape[1:], lambda i: (i, 0, 0))
                      for op in operands],
            out_specs=[pl.BlockSpec((1,) + s.shape[1:], lambda i: (i, 0, 0))
                       for s in out_shapes],
            compiler_params=pltpu.CompilerParams(
                dimension_semantics=("parallel",)),   # v7x: 2 TCs split levels
            cost_estimate=pl.CostEstimate(
                flops=cost[0], transcendentals=cost[1], bytes_accessed=cost[2]),
        )
    return _PALLAS_CACHE[cache_key](*operands)


def _avgmax_call(x):
    out_shape = jax.ShapeDtypeStruct((2, x.shape[1]), jnp.float32)
    key = ("avgmax", x.shape)
    if key not in _PALLAS_CACHE:
        _PALLAS_CACHE[key] = pl.pallas_call(
            _avgmax_kernel,
            out_shape=out_shape,
            grid=(1,),
            in_specs=[pl.BlockSpec(x.shape, lambda i: (0, 0))],
            out_specs=pl.BlockSpec(out_shape.shape, lambda i: (0, 0)),
            compiler_params=pltpu.CompilerParams(
                dimension_semantics=("arbitrary",)),
            cost_estimate=pl.CostEstimate(
                flops=2 * int(x.size), transcendentals=0,
                bytes_accessed=(int(x.size) + 2 * int(x.shape[1])) * 4),
        )
    return _PALLAS_CACHE[key](x)


# -----------------------------------------------------------------------------
# prepared fused matmul chains
# -----------------------------------------------------------------------------
class Chain:
    """A fused (matmul + bias + activation) chain, prepared once.

    Holds, for each step s, a weight stack (L, Kp_s, Np_s) in bf16 and a bias
    stack (L, 1, Np_s) in f32 where L is the number of sibling modules
    (pyramid levels) sharing the architecture; K/N are zero-padded to lane
    multiples so the MXU sees dense tiles and stores are unmasked.
    """

    def __init__(self, steps_per_level):
        n_lvl = len(steps_per_level)
        n_steps = len(steps_per_level[0])
        k0 = int(steps_per_level[0][0][0].shape[0])
        prev_p = _rup(k0)
        ws, bs, acts, true_n = [], [], [], []
        for s in range(n_steps):
            k, n = (int(d) for d in steps_per_level[0][s][0].shape)
            if s > 0:
                assert k == true_n[-1]
            np_ = _rup(n)
            w_stack = jnp.zeros((n_lvl, prev_p, np_), jnp.float32)
            b_stack = jnp.zeros((n_lvl, 1, np_), jnp.float32)
            for l in range(n_lvl):
                w, b, _ = steps_per_level[l][s]
                assert w.shape == (k, n)
                w_stack = w_stack.at[l, :k, :n].set(w.astype(jnp.float32))
                if b is not None:
                    b_stack = b_stack.at[l, 0, :n].set(b.astype(jnp.float32))
            ws.append(w_stack.astype(jnp.bfloat16))
            bs.append(b_stack)
            acts.append(steps_per_level[0][s][2])
            true_n.append(n)
            prev_p = np_
        self.n_lvl, self.n_steps = n_lvl, n_steps
        self.k0, self.k0p = k0, _rup(k0)
        self.ws, self.bs = ws, bs
        self.acts, self.true_n = tuple(acts), tuple(true_n)


def mm_chain(a, chain, emits=None):
    """Run a prepared Chain in ONE Pallas launch.

    a     : a single (M, K0) array (L == 1) or a list of L per-level arrays.
    emits : step indices whose f32 outputs are returned (default: last step).
    Returns, per emitted step, a (M, true_n) array (or list of per-level
    arrays, matching the input form).
    """
    single = not isinstance(a, (list, tuple))
    a_list = [a] if single else list(a)
    assert len(a_list) == chain.n_lvl
    n_steps = chain.n_steps
    if emits is None:
        emits = (n_steps - 1,)
    emits = tuple(sorted({int(e) for e in emits}))

    Ms = [int(x.shape[0]) for x in a_list]
    m_max = max(Ms)
    stacked = jnp.stack(
        [jnp.pad(x.astype(jnp.float32),
                 ((0, m_max - x.shape[0]), (0, chain.k0p - x.shape[1])))
         for x in a_list], axis=0).astype(jnp.bfloat16)

    operands = [stacked]
    for w, b in zip(chain.ws, chain.bs):
        operands += [w, b]

    out_shapes = [jax.ShapeDtypeStruct(
        (chain.n_lvl, m_max, int(chain.ws[s].shape[-1])), jnp.float32)
        for s in emits]

    flops = 2 * chain.n_lvl * m_max * sum(
        int(w.shape[1]) * int(w.shape[2]) for w in chain.ws)
    transc = chain.n_lvl * m_max * sum(
        int(chain.ws[s].shape[2]) for s in range(n_steps)
        if chain.acts[s] in ("sigmoid", "relu_sigmoid"))
    bytes_acc = sum(int(op.size) * op.dtype.itemsize for op in operands)
    bytes_acc += sum(math.prod(s.shape) * 4 for s in out_shapes)

    key = ("chain", tuple(op.shape for op in operands), chain.acts, emits)
    kernel = functools.partial(_chain_kernel, n_steps=n_steps,
                               acts=chain.acts, emits=emits)
    outs = _chain_call(kernel, operands, out_shapes, chain.n_lvl,
                       (int(flops), int(transc), int(bytes_acc)), key)

    results = []
    for s, o in zip(emits, outs):
        per_lvl = [o[l, :Ms[l], :chain.true_n[s]] for l in range(chain.n_lvl)]
        results.append(per_lvl[0] if single else per_lvl)
    return results


def channel_avg_max_all(xr_list, xd_list):
    """Per-pixel channel mean/max of all levels of BOTH streams, one kernel.

    Channels sit on sublanes and pixels on lanes -> one lane-dense (2, M)
    store; returns per-level (B,H,W,2) maps with channel order [mean, max]
    (matching torch.cat([avg, max], dim=1))."""
    cols, meta, off = [], [], 0
    for x in list(xr_list) + list(xd_list):
        B, H, W, C = x.shape
        M = B * H * W
        cols.append(x.reshape(M, C).T)
        meta.append((off, B, H, W, M))
        off += M
    xx = _pad_axis(jnp.concatenate(cols, axis=1).astype(jnp.float32), 1, 128)
    out = _avgmax_call(xx)
    maps = [out[:, o:o + M].T.reshape(B, H, W, 2) for (o, B, H, W, M) in meta]
    n = len(xr_list)
    return maps[:n], maps[n:]


# -----------------------------------------------------------------------------
# conv glue: NHWC im2col + weight packing (all stride-1 in this module)
# -----------------------------------------------------------------------------
def im2col_nhwc(x, kh, kw, pad, dil=(1, 1)):
    """Patches in NHWC; column order is (kh, kw) outer, C inner — matching
    w.transpose(2, 3, 1, 0).reshape(kh*kw*Cin, Cout)."""
    B, H, W, C = x.shape
    ph, pw = pad
    dh, dw = dil
    oh = H + 2 * ph - (dh * (kh - 1) + 1) + 1
    ow = W + 2 * pw - (dw * (kw - 1) + 1) + 1
    xp = jnp.pad(x, ((0, 0), (ph, ph), (pw, pw), (0, 0)))
    cols = []
    for i in range(kh):
        for j in range(kw):
            cols.append(xp[:, i * dh:i * dh + oh, j * dw:j * dw + ow, :])
    a = jnp.concatenate(cols, axis=-1)
    return a.reshape(B * oh * ow, kh * kw * C), oh, ow


def w_mat(w):
    """PyTorch (Cout, Cin, kh, kw) -> (kh*kw*Cin, Cout) matmul weight."""
    co, ci, kh, kw = w.shape
    return w.transpose(2, 3, 1, 0).reshape(kh * kw * ci, co)


def fold_bn(w, b, bn, eps=1e-5):
    gamma, beta, mean, var = bn
    scale = gamma / jnp.sqrt(var + eps)
    w_f = w * scale[:, None, None, None]
    b0 = b if b is not None else jnp.zeros((w.shape[0],), jnp.float32)
    b_f = (b0 - mean) * scale + beta
    return w_f, b_f


def basic_mat(p):
    """BasicConv2d (conv, no bias) + BatchNorm folded -> (W_mat, bias)."""
    w, b = fold_bn(p["w"], None, p["bn"])
    return w_mat(w), b


def block_diag_mats(mats):
    ks = sum(m.shape[0] for m in mats)
    ns = sum(m.shape[1] for m in mats)
    out = jnp.zeros((ks, ns), jnp.float32)
    r = c = 0
    for m in mats:
        out = out.at[r:r + m.shape[0], c:c + m.shape[1]].set(m)
        r += m.shape[0]
        c += m.shape[1]
    return out


# -----------------------------------------------------------------------------
# misc glue ops (NHWC)
# -----------------------------------------------------------------------------
def upsample_nhwc(x, scale):
    """nn.Upsample(scale_factor=scale, mode='bilinear', align_corners=True)."""
    B, H, W, C = x.shape
    Ho, Wo = H * scale, W * scale

    def coords(n_in, n_out):
        if n_in == 1:
            z = jnp.zeros((n_out,), jnp.int32)
            return z, z, jnp.zeros((n_out,), jnp.float32)
        s = jnp.arange(n_out, dtype=jnp.float32) * (n_in - 1) / (n_out - 1)
        i0 = jnp.clip(jnp.floor(s).astype(jnp.int32), 0, n_in - 2)
        return i0, i0 + 1, s - i0.astype(jnp.float32)

    r0, r1, wr = coords(H, Ho)
    c0, c1, wc = coords(W, Wo)
    xr = (x[:, r0, :, :] * (1.0 - wr)[None, :, None, None]
          + x[:, r1, :, :] * wr[None, :, None, None])
    out = (xr[:, :, c0, :] * (1.0 - wc)[None, None, :, None]
           + xr[:, :, c1, :] * wc[None, None, :, None])
    return out


def up2(x):
    return upsample_nhwc(x, 2)


def maxpool2_nhwc(x):
    B, H, W, C = x.shape
    return x.reshape(B, H // 2, 2, W // 2, 2, C).max(axis=(2, 4))


def gkern_1d(kernlen=31, nsig=4):
    """1-D factor a such that outer(a, a) == normalized sqrt(outer(k, k))."""
    interval = (2 * nsig + 1.0) / kernlen
    xs = jnp.linspace(-nsig - interval / 2.0, nsig + interval / 2.0, kernlen + 1)
    cdf = 0.5 * (1.0 + jax.lax.erf(xs / jnp.sqrt(2.0)))
    k1d = jnp.diff(cdf)
    a = jnp.sqrt(k1d)
    return a / a.sum()


def min_max_norm(t):
    mx = t.max(axis=(1, 2), keepdims=True)
    mn = t.min(axis=(1, 2), keepdims=True)
    return (t - mn) / (mx - mn + 1e-8)


# -----------------------------------------------------------------------------
# parameter construction (deterministic)
# -----------------------------------------------------------------------------
class PRNG:
    def __init__(self, key):
        self.key = key

    def next(self):
        self.key, sub = jax.random.split(self.key)
        return sub


def conv_params(rng, cout, cin, kh, kw, bias=True, std=0.05):
    p = {"w": jax.random.normal(rng.next(), (cout, cin, kh, kw), jnp.float32) * std}
    p["b"] = jnp.zeros((cout,), jnp.float32) if bias else None
    return p


def bn_params(c):
    return (jnp.ones((c,), jnp.float32), jnp.zeros((c,), jnp.float32),
            jnp.zeros((c,), jnp.float32), jnp.ones((c,), jnp.float32))


def basic_params(rng, cin, cout, kh, kw, std=0.05):
    return {"w": jax.random.normal(rng.next(), (cout, cin, kh, kw), jnp.float32) * std,
            "bn": bn_params(cout)}


def bmf_params(rng):
    return {
        "ca_rgb": conv_params(rng, 32, 32, 1, 1),
        "sa_rgb": conv_params(rng, 1, 2, 7, 7),
        "ca_d": conv_params(rng, 32, 32, 1, 1),
        "sa_d": conv_params(rng, 1, 2, 7, 7),
        "cross": conv_params(rng, 32, 64, 1, 1),
        "deform_c": conv_params(rng, 32, 32, 1, 1, bias=False),
        "b3x3": conv_params(rng, 32, 32, 3, 3),
        "deform_1": conv_params(rng, 32, 32, 1, 1, bias=False),
        "sal": conv_params(rng, 1, 32, 1, 1),
        "edge": conv_params(rng, 1, 32, 1, 1),
        "fusion": conv_params(rng, 32, 66, 1, 1),
        "deform_2": conv_params(rng, 32, 32, 1, 1, bias=False),
        "conv1_sal": conv_params(rng, 1, 32, 1, 1),
    }


def rfb_params(rng, cin, cout):
    return {
        "b0_0": basic_params(rng, cin, cout, 1, 1),
        "d0": conv_params(rng, cout, cout, 1, 1, bias=False),
        "b1_0": basic_params(rng, cin, cout, 1, 1),
        "b1_1": basic_params(rng, cout, cout, 1, 3),
        "b1_2": basic_params(rng, cout, cout, 3, 1),
        "b1_3": basic_params(rng, cout, cout, 3, 3),
        "d1": conv_params(rng, cout, cout, 1, 1, bias=False),
        "b2_0": basic_params(rng, cin, cout, 1, 1),
        "b2_1": basic_params(rng, cout, cout, 1, 5),
        "b2_2": basic_params(rng, cout, cout, 5, 1),
        "b2_3": basic_params(rng, cout, cout, 3, 3),
        "d2": conv_params(rng, cout, cout, 1, 1, bias=False),
        "b3_0": basic_params(rng, cin, cout, 1, 1),
        "b3_1": basic_params(rng, cout, cout, 1, 7),
        "b3_2": basic_params(rng, cout, cout, 7, 1),
        "b3_3": basic_params(rng, cout, cout, 3, 3),
        "d3": conv_params(rng, cout, cout, 1, 1, bias=False),
        "cat": basic_params(rng, 4 * cout, cout, 3, 3),
        "res": basic_params(rng, cin, cout, 1, 1),
    }


def agg_params(rng, c):
    return {
        "u1": basic_params(rng, c, c, 3, 3),
        "u2": basic_params(rng, c, c, 3, 3),
        "u3": basic_params(rng, c, c, 3, 3),
        "u4": basic_params(rng, c, c, 3, 3),
        "u5": basic_params(rng, 2 * c, 2 * c, 3, 3),
        "cat2": basic_params(rng, 2 * c, 2 * c, 3, 3),
        "cat3": basic_params(rng, 3 * c, 3 * c, 3, 3),
        "c4": basic_params(rng, 3 * c, 3 * c, 3, 3),
        "c5": conv_params(rng, 1, 3 * c, 1, 1),
    }


def conv_block_params(rng, c):
    return {
        "w1": jax.random.normal(rng.next(), (c, c, 3, 3), jnp.float32) * 0.05,
        "b1": jnp.zeros((c,), jnp.float32),
        "bn1": bn_params(c),
        "w2": jax.random.normal(rng.next(), (c, c, 1, 1), jnp.float32) * 0.05,
        "b2": jnp.zeros((c,), jnp.float32),
        "bn2": bn_params(c),
    }


def fusion_params(rng, c=32):
    return {
        "BMF3": bmf_params(rng), "BMF4": bmf_params(rng), "BMF5": bmf_params(rng),
        "rfb3_1": rfb_params(rng, c, c), "rfb4_1": rfb_params(rng, c, c),
        "rfb5_1": rfb_params(rng, c, c),
        "agg1": agg_params(rng, c),
        "rfb3_2": rfb_params(rng, c, c), "rfb4_2": rfb_params(rng, c, c),
        "rfb5_2": rfb_params(rng, c, c),
        "agg2": agg_params(rng, c),
        "conv4": conv_block_params(rng, c),
        "conv5": conv_block_params(rng, c),
        "ha_gauss1d": gkern_1d(31, 4),
    }


# -----------------------------------------------------------------------------
# one-time weight preparation (BN folding, packing, padding, bf16 casts)
# -----------------------------------------------------------------------------
def _basic_step(p):
    w, b = basic_mat(p)
    return (w, b, "none")


def prepare_bmf(plist):
    def ca(p):
        w = jnp.concatenate([w_mat(p["ca_rgb"]["w"]), w_mat(p["ca_d"]["w"])], axis=1)
        b = jnp.concatenate([p["ca_rgb"]["b"], p["ca_d"]["b"]], axis=0)
        return [(w, b, "relu_sigmoid")]

    def sa(p):
        w = jnp.concatenate([w_mat(p["sa_rgb"]["w"]), w_mat(p["sa_d"]["w"])], axis=1)
        b = jnp.concatenate([p["sa_rgb"]["b"], p["sa_d"]["b"]], axis=0)
        return [(w, b, "relu_sigmoid")]

    def cross(p):
        return [(w_mat(p["cross"]["w"]), p["cross"]["b"], "none"),
                (w_mat(p["deform_c"]["w"]), None, "none")]

    def b3(p):
        return [(w_mat(p["b3x3"]["w"]), p["b3x3"]["b"], "none"),
                (w_mat(p["deform_1"]["w"]), None, "none"),
                (w_mat(p["sal"]["w"]), p["sal"]["b"], "none")]

    def edge(p):
        return [(w_mat(p["edge"]["w"]), p["edge"]["b"], "none")]

    def fus(p):
        return [(w_mat(p["fusion"]["w"]), p["fusion"]["b"], "none"),
                (w_mat(p["deform_2"]["w"]), None, "none"),
                (w_mat(p["conv1_sal"]["w"]), p["conv1_sal"]["b"], "none")]

    return {"ca": Chain([ca(p) for p in plist]),
            "sa": Chain([sa(p) for p in plist]),
            "cross": Chain([cross(p) for p in plist]),
            "b3": Chain([b3(p) for p in plist]),
            "edge": Chain([edge(p) for p in plist]),
            "fus": Chain([fus(p) for p in plist])}


def prepare_rfb(plist, c):
    def start(p):
        mats = [basic_mat(p["b0_0"]), basic_mat(p["b1_0"]),
                basic_mat(p["b2_0"]), basic_mat(p["b3_0"]), basic_mat(p["res"])]
        w0 = jnp.concatenate([m[0] for m in mats], axis=1)            # (C, 5C)
        b0 = jnp.concatenate([m[1] for m in mats], axis=0)
        wd0 = jnp.zeros((5 * c, c), jnp.float32).at[:c, :].set(w_mat(p["d0"]["w"]))
        return [(w0, b0, "none"), (wd0, None, "none")]

    def s1(p):
        m1, m2, m3 = basic_mat(p["b1_1"]), basic_mat(p["b2_1"]), basic_mat(p["b3_1"])
        return [(block_diag_mats([m1[0], m2[0], m3[0]]),
                 jnp.concatenate([m1[1], m2[1], m3[1]]), "none")]

    def s2(p):
        m1, m2, m3 = basic_mat(p["b1_2"]), basic_mat(p["b2_2"]), basic_mat(p["b3_2"])
        return [(block_diag_mats([m1[0], m2[0], m3[0]]),
                 jnp.concatenate([m1[1], m2[1], m3[1]]), "none")]

    def s3(p):
        m1, m2, m3 = basic_mat(p["b1_3"]), basic_mat(p["b2_3"]), basic_mat(p["b3_3"])
        wd = block_diag_mats([w_mat(p["d1"]["w"]), w_mat(p["d2"]["w"]),
                              w_mat(p["d3"]["w"])])
        return [(block_diag_mats([m1[0], m2[0], m3[0]]),
                 jnp.concatenate([m1[1], m2[1], m3[1]]), "none"),
                (wd, None, "none")]

    def cat(p):
        return [_basic_step(p["cat"])]

    return {"start": Chain([start(p) for p in plist]),
            "s1": Chain([s1(p) for p in plist]),
            "s2": Chain([s2(p) for p in plist]),
            "s3": Chain([s3(p) for p in plist]),
            "cat": Chain([cat(p) for p in plist])}


def prepare_agg(p):
    m1, m4 = basic_mat(p["u1"]), basic_mat(p["u4"])
    m2, m3 = basic_mat(p["u2"]), basic_mat(p["u3"])
    return {
        "u14": Chain([[(jnp.concatenate([m1[0], m4[0]], axis=1),
                        jnp.concatenate([m1[1], m4[1]]), "none")]]),
        "u23": Chain([[(block_diag_mats([m2[0], m3[0]]),
                        jnp.concatenate([m2[1], m3[1]]), "none")]]),
        "cat2": Chain([[_basic_step(p["cat2"])]]),
        "u5": Chain([[_basic_step(p["u5"])]]),
        "cat3": Chain([[_basic_step(p["cat3"])]]),
        "c45": Chain([[_basic_step(p["c4"]),
                       (w_mat(p["c5"]["w"]), p["c5"]["b"], "none")]]),
    }


def prepare_conv_block(p):
    w1, b1 = fold_bn(p["w1"], p["b1"], p["bn1"])
    w2, b2 = fold_bn(p["w2"], p["b2"], p["bn2"])
    return {"c1": Chain([[(w_mat(w1), b1, "relu")]]),
            "c2": Chain([[(w_mat(w2), b2, "relu")]])}


def prepare_ha(g1d):
    g = g1d.reshape(31, 1).astype(jnp.float32)
    return {"row": Chain([[(g, None, "none")]]),
            "col": Chain([[(g, None, "none")]])}


def prepare_fusion(params, c=32):
    return {
        "bmf": prepare_bmf([params["BMF3"], params["BMF4"], params["BMF5"]]),
        "rfb1": prepare_rfb([params["rfb3_1"], params["rfb4_1"], params["rfb5_1"]], c),
        "rfb2": prepare_rfb([params["rfb3_2"], params["rfb4_2"], params["rfb5_2"]], c),
        "agg1": prepare_agg(params["agg1"]),
        "agg2": prepare_agg(params["agg2"]),
        "conv4": prepare_conv_block(params["conv4"]),
        "conv5": prepare_conv_block(params["conv5"]),
        "ha": prepare_ha(params["ha_gauss1d"]),
    }


# -----------------------------------------------------------------------------
# module forwards (NHWC activations; the three pyramid levels are processed
# together -> one pallas launch per stage)
# -----------------------------------------------------------------------------
def bmf_forward(prep, xs_r, xs_d):
    shapes = [x.shape for x in xs_r]
    C = shapes[0][-1]
    L = len(xs_r)

    # channel attention (rgb + depth packed along N, 3 levels per launch)
    a_ca = [jnp.concatenate([xr.mean(axis=(1, 2)), xd.mean(axis=(1, 2))], axis=0)
            for xr, xd in zip(xs_r, xs_d)]
    ca = mm_chain(a_ca, prep["ca"])[0]
    SCA_ca = [c_l[:sh[0], :C].reshape(sh[0], 1, 1, C) for c_l, sh in zip(ca, shapes)]
    SCA_d_ca = [c_l[sh[0]:, C:2 * C].reshape(sh[0], 1, 1, C)
                for c_l, sh in zip(ca, shapes)]

    SCA_o1 = [xr * s for xr, s in zip(xs_r, SCA_ca)]
    SCA_d_o1 = [xd * s for xd, s in zip(xs_d, SCA_d_ca)]

    # channel mean/max of both streams, all levels (one lane-dense kernel)
    sa_r, sa_d = channel_avg_max_all(SCA_o1, SCA_d_o1)

    # 7x7 spatial attention (rgb + depth packed along N)
    a_sa = []
    for mr, md in zip(sa_r, sa_d):
        ar, _, _ = im2col_nhwc(mr, 7, 7, (3, 3))
        ad, _, _ = im2col_nhwc(md, 7, 7, (3, 3))
        a_sa.append(jnp.concatenate([ar, ad], axis=0))                # (2M, 98)
    sa = mm_chain(a_sa, prep["sa"])[0]
    SCA_o2, SCA_d_o2 = [], []
    for s_l, (B, H, W, _) in zip(sa, shapes):
        M = B * H * W
        SCA_o2.append(s_l[:M, 0:1].reshape(B, H, W, 1))
        SCA_d_o2.append(s_l[M:, 1:2].reshape(B, H, W, 1))

    # co-attention + cross 1x1 + deform 1x1 (one fused chain)
    cr_in = []
    for l in range(L):
        B, H, W, _ = shapes[l]
        co = jax.nn.softmax(SCA_ca[l] + SCA_d_ca[l], axis=-1)
        cr_rgb = SCA_o1[l] * SCA_o2[l] + xs_r[l] * co
        cr_d = SCA_d_o1[l] * SCA_d_o2[l] + xs_d[l] * co
        cr_in.append(jnp.concatenate([cr_rgb, cr_d], axis=-1).reshape(B * H * W, 2 * C))
    CR_fea = mm_chain(cr_in, prep["cross"])[0]                        # per level (M, C)

    # boundary-aware: 3x3 -> deform -> sal head (one fused chain, 2 emits)
    a_b = []
    for l in range(L):
        B, H, W, _ = shapes[l]
        a, _, _ = im2col_nhwc(CR_fea[l].reshape(B, H, W, C), 3, 3, (1, 1))
        a_b.append(a)
    content, sal = mm_chain(a_b, prep["b3"], emits=(1, 2))

    edge_fea = [CR_fea[l] * (1.0 - jax.nn.sigmoid(sal[l])) for l in range(L)]
    edge = mm_chain(edge_fea, prep["edge"])[0]

    multimodal = [jnp.concatenate([content[l], sal[l], edge_fea[l], edge[l]], axis=1)
                  for l in range(L)]
    mfea, med = mm_chain(multimodal, prep["fus"], emits=(1, 2))

    xs, sals, edges, meds = [], [], [], []
    for l in range(L):
        B, H, W, _ = shapes[l]
        xs.append(mfea[l].reshape(B, H, W, C))
        sals.append(sal[l].reshape(B, H, W, 1))
        edges.append(edge[l].reshape(B, H, W, 1))
        meds.append(med[l].reshape(B, H, W, 1))
    return xs, sals, edges, meds


def rfb_forward(prep, xs):
    shapes = [x.shape for x in xs]
    C = shapes[0][-1]
    L = len(xs)

    # R1: four branch-entry 1x1 BasicConvs + res packed along N, chained with
    #     branch0's 1x1 deform (one launch, 2 emits, 3 levels)
    starts, x0 = mm_chain([x.reshape(-1, C) for x in xs], prep["start"],
                          emits=(0, 1))
    y1_0 = [s[:, C:2 * C].reshape(sh[0], sh[1], sh[2], C) for s, sh in zip(starts, shapes)]
    y2_0 = [s[:, 2 * C:3 * C].reshape(sh[0], sh[1], sh[2], C) for s, sh in zip(starts, shapes)]
    y3_0 = [s[:, 3 * C:4 * C].reshape(sh[0], sh[1], sh[2], C) for s, sh in zip(starts, shapes)]
    res = [s[:, 4 * C:5 * C] for s in starts]

    def pack3(ys, specs):
        packed = []
        for l in range(L):
            cols = []
            for y, (kh, kw, pad, dil) in zip(ys, specs):
                a, _, _ = im2col_nhwc(y[l], kh, kw, pad, dil)
                cols.append(a)
            packed.append(jnp.concatenate(cols, axis=1))
        return packed

    # S1: 1x3 / 1x5 / 1x7 convs, block-diagonally packed (one launch)
    a1 = pack3([y1_0, y2_0, y3_0],
               [(1, 3, (0, 1), (1, 1)), (1, 5, (0, 2), (1, 1)), (1, 7, (0, 3), (1, 1))])
    y_1 = mm_chain(a1, prep["s1"])[0]
    y1_1 = [y[:, :C].reshape(sh[0], sh[1], sh[2], C) for y, sh in zip(y_1, shapes)]
    y2_1 = [y[:, C:2 * C].reshape(sh[0], sh[1], sh[2], C) for y, sh in zip(y_1, shapes)]
    y3_1 = [y[:, 2 * C:].reshape(sh[0], sh[1], sh[2], C) for y, sh in zip(y_1, shapes)]

    # S2: 3x1 / 5x1 / 7x1 convs, block-diagonally packed
    a2 = pack3([y1_1, y2_1, y3_1],
               [(3, 1, (1, 0), (1, 1)), (5, 1, (2, 0), (1, 1)), (7, 1, (3, 0), (1, 1))])
    y_2 = mm_chain(a2, prep["s2"])[0]
    y1_2 = [y[:, :C].reshape(sh[0], sh[1], sh[2], C) for y, sh in zip(y_2, shapes)]
    y2_2 = [y[:, C:2 * C].reshape(sh[0], sh[1], sh[2], C) for y, sh in zip(y_2, shapes)]
    y3_2 = [y[:, 2 * C:].reshape(sh[0], sh[1], sh[2], C) for y, sh in zip(y_2, shapes)]

    # S3: dilated 3x3 convs + their 1x1 deforms (one fused chain)
    a3 = pack3([y1_2, y2_2, y3_2],
               [(3, 3, (3, 3), (3, 3)), (3, 3, (5, 5), (5, 5)), (3, 3, (7, 7), (7, 7))])
    xbr = mm_chain(a3, prep["s3"])[0]                                 # per level (M, 3C)

    # concat conv (3x3, 4C -> C) + residual ReLU
    a_cat = []
    for l in range(L):
        B, H, W, _ = shapes[l]
        xc = jnp.concatenate([x0[l], xbr[l]], axis=1).reshape(B, H, W, 4 * C)
        a, _, _ = im2col_nhwc(xc, 3, 3, (1, 1))
        a_cat.append(a)
    x_cat = mm_chain(a_cat, prep["cat"])[0]

    return [jnp.maximum(x_cat[l] + res[l], 0.0).reshape(
        shapes[l][0], shapes[l][1], shapes[l][2], C) for l in range(L)]


def agg_forward(prep, x1, x2, x3):
    C = x1.shape[-1]

    # conv_upsample1 and conv_upsample4 share up(x1) -> packed along N
    t1 = up2(x1)
    B2, H2, W2, _ = t1.shape
    a_t1, _, _ = im2col_nhwc(t1, 3, 3, (1, 1))
    o14 = mm_chain(a_t1, prep["u14"])[0]
    x2_1 = o14[:, :C].reshape(B2, H2, W2, C) * x2
    o_u4 = o14[:, C:].reshape(B2, H2, W2, C)

    # conv_upsample2 (on up(up(x1))) and conv_upsample3 (on up(x2)) -> block-diag
    t2, t3 = up2(up2(x1)), up2(x2)
    B3, H3, W3, _ = t2.shape
    a2, _, _ = im2col_nhwc(t2, 3, 3, (1, 1))
    a3, _, _ = im2col_nhwc(t3, 3, 3, (1, 1))
    o23 = mm_chain(jnp.concatenate([a2, a3], axis=1), prep["u23"])[0]
    x3_1 = (o23[:, :C].reshape(B3, H3, W3, C)
            * o23[:, C:].reshape(B3, H3, W3, C) * x3)

    # conv_concat2
    a_c2, _, _ = im2col_nhwc(jnp.concatenate([x2_1, o_u4], axis=-1), 3, 3, (1, 1))
    x2_2 = mm_chain(a_c2, prep["cat2"])[0].reshape(B2, H2, W2, 2 * C)

    # conv_upsample5(up(x2_2))
    a_u5, _, _ = im2col_nhwc(up2(x2_2), 3, 3, (1, 1))
    o_u5 = mm_chain(a_u5, prep["u5"])[0].reshape(B3, H3, W3, 2 * C)

    # conv_concat3
    a_c3, _, _ = im2col_nhwc(jnp.concatenate([x3_1, o_u5], axis=-1), 3, 3, (1, 1))
    x3_2 = mm_chain(a_c3, prep["cat3"])[0].reshape(B3, H3, W3, 3 * C)

    # conv4 (3x3) -> conv5 (1x1, N=1) fused chain
    a_c4, _, _ = im2col_nhwc(x3_2, 3, 3, (1, 1))
    return mm_chain(a_c4, prep["c45"])[0].reshape(B3, H3, W3, 1)


def ha_forward(prep, attention, x):
    # TODO(synk): HA source not provided; CPD holistic attention stand-in.
    # The 31x31 Gaussian is rank-1 -> separable 1x31 then 31x1 blur.
    B, H, W, _ = attention.shape
    a, _, _ = im2col_nhwc(attention, 1, 31, (0, 15))
    soft = mm_chain(a, prep["row"])[0].reshape(B, H, W, 1)
    a, _, _ = im2col_nhwc(soft, 31, 1, (15, 0))
    soft = min_max_norm(mm_chain(a, prep["col"])[0].reshape(B, H, W, 1))
    return x * jnp.maximum(soft, attention)


def conv_block(prep, x):
    B, H, W, C = x.shape
    a, _, _ = im2col_nhwc(x, 3, 3, (1, 1))
    y = mm_chain(a, prep["c1"])[0].reshape(B, H, W, C)
    y = maxpool2_nhwc(y)
    B2, H2, W2, _ = y.shape
    y = mm_chain(y.reshape(B2 * H2 * W2, C), prep["c2"])[0]
    return y.reshape(B2, H2, W2, C)


def fusion_forward(prep, x3_r, x4_r, x5_r, x3_d, x4_d, x5_d):
    to_nhwc = lambda t: jnp.transpose(t, (0, 2, 3, 1))
    to_nchw = lambda t: jnp.transpose(t, (0, 3, 1, 2))
    xs_r = [to_nhwc(t) for t in (x3_r, x4_r, x5_r)]
    xs_d = [to_nhwc(t) for t in (x3_d, x4_d, x5_d)]

    xs, sals, edges, meds = bmf_forward(prep["bmf"], xs_r, xs_d)
    x3 = xs[0]

    x3_1, x4_1, x5_1 = rfb_forward(prep["rfb1"], xs)
    attention_map = agg_forward(prep["agg1"], x5_1, x4_1, x3_1)

    x3_2 = ha_forward(prep["ha"], jax.nn.sigmoid(attention_map), x3)
    x4_2 = conv_block(prep["conv4"], x3_2)
    x5_2 = conv_block(prep["conv5"], x4_2)
    x3_2, x4_2, x5_2 = rfb_forward(prep["rfb2"], [x3_2, x4_2, x5_2])
    detection_map = agg_forward(prep["agg2"], x5_2, x4_2, x3_2)

    up = upsample_nhwc
    return (to_nchw(up(attention_map, 8)), to_nchw(up(detection_map, 8)),
            [to_nchw(up(sals[0], 8)), to_nchw(up(edges[0], 8))],
            [to_nchw(up(sals[1], 16)), to_nchw(up(edges[1], 16))],
            [to_nchw(up(sals[2], 32)), to_nchw(up(edges[2], 32))],
            [to_nchw(up(meds[0], 8)), to_nchw(up(meds[1], 16)),
             to_nchw(up(meds[2], 32))])


# -----------------------------------------------------------------------------
if __name__ == "__main__":
    key = jax.random.PRNGKey(0)
    ks = jax.random.split(key, 7)
    B, C = 2, 32
    x3_r = jax.random.normal(ks[0], (B, C, 8, 8), jnp.float32)
    x4_r = jax.random.normal(ks[1], (B, C, 4, 4), jnp.float32)
    x5_r = jax.random.normal(ks[2], (B, C, 2, 2), jnp.float32)
    x3_d = jax.random.normal(ks[3], (B, C, 8, 8), jnp.float32)
    x4_d = jax.random.normal(ks[4], (B, C, 4, 4), jnp.float32)
    x5_d = jax.random.normal(ks[5], (B, C, 2, 2), jnp.float32)

    params = fusion_params(PRNG(ks[6]), c=C)
    prep = prepare_fusion(params, c=C)            # one-time weight packing
    fwd = jax.jit(functools.partial(fusion_forward, prep))

    outs = fwd(x3_r, x4_r, x5_r, x3_d, x4_d, x5_d)
    outs = jax.block_until_ready(outs)

    # light sanity checks on output shapes / values
    assert outs[0].shape == (B, 1, 64, 64) and outs[1].shape == (B, 1, 64, 64)
    assert outs[2][0].shape == (B, 1, 64, 64) and outs[5][2].shape == (B, 1, 64, 64)
    assert all(bool(jnp.isfinite(o).all()) for o in
               (outs[0], outs[1], outs[2][0], outs[3][1], outs[4][0], outs[5][2]))
    print("KERNEL_OK")
</pallas_src>

<mosaic_0001>
module attributes {stable_mosaic.version = 11 : i64} {
  func.func @_chain_kernel(%arg0: i32, %arg1: memref<1x4x128xbf16, #tpu.memory_space<vmem>>, %arg2: memref<1x128x128xbf16, #tpu.memory_space<vmem>>, %arg3: memref<1x1x128xf32, #tpu.memory_space<vmem>>, %arg4: memref<1x4x128xf32, #tpu.memory_space<vmem>>) attributes {dimension_semantics = [#tpu.dimension_semantics<parallel>], iteration_bounds = array<i64: 3>, scalar_prefetch = 0 : i64, scratch_operands = 0 : i64, tpu.core_type = #tpu.core_type<tc>, window_params = [{transform_indices = @transform_0, window_bounds = array<i64: 1, 4, 128>}, {transform_indices = @transform_1, window_bounds = array<i64: 1, 128, 128>}, {transform_indices = @transform_2, window_bounds = array<i64: 1, 1, 128>}, {transform_indices = @transform_3, window_bounds = array<i64: 1, 4, 128>}]} {
    %c0 = arith.constant 0 : index
    %c0_0 = arith.constant 0 : index
    %c0_1 = arith.constant 0 : index
    %0 = vector.load %arg1[%c0, %c0_0, %c0_1] : memref<1x4x128xbf16, #tpu.memory_space<vmem>>, vector<1x4x128xbf16>
    %1 = vector.shape_cast %0 : vector<1x4x128xbf16> to vector<4x128xbf16>
    %c0_2 = arith.constant 0 : index
    %c0_3 = arith.constant 0 : index
    %c0_4 = arith.constant 0 : index
    %2 = vector.load %arg2[%c0_2, %c0_3, %c0_4] : memref<1x128x128xbf16, #tpu.memory_space<vmem>>, vector<1x128x128xbf16>
    %3 = vector.shape_cast %2 : vector<1x128x128xbf16> to vector<128x128xbf16>
    %c0_5 = arith.constant 0 : index
    %c0_6 = arith.constant 0 : index
    %c0_7 = arith.constant 0 : index
    %4 = vector.load %arg3[%c0_5, %c0_6, %c0_7] : memref<1x1x128xf32, #tpu.memory_space<vmem>>, vector<1x1x128xf32>
    %5 = vector.shape_cast %4 : vector<1x1x128xf32> to vector<1x128xf32>
    %cst = arith.constant dense<0.000000e+00> : vector<4x128xf32>
    %6 = tpu.matmul %1, %3, %cst {dimension_numbers = #tpu.dot_dimension_numbers<[1], [0], [0], [1], [0, 0, 1, 1], [], []>} : vector<4x128xbf16>, vector<128x128xbf16>, vector<4x128xf32> -> vector<4x128xf32>
    %7 = vector.broadcast %5 : vector<1x128xf32> to vector<4x128xf32>
    %8 = arith.addf %6, %7 : vector<4x128xf32>
    %cst_8 = arith.constant 0.000000e+00 : f32
    %9 = vector.broadcast %cst_8 : f32 to vector<4x128xf32>
    %10 = arith.maximumf %8, %9 : vector<4x128xf32>
    %cst_9 = arith.constant 0.000000e+00 : f32
    %11 = vector.broadcast %cst_9 : f32 to vector<4x128xf32>
    %12 = arith.subf %11, %10 : vector<4x128xf32>
    %13 = math.exp %12 : vector<4x128xf32>
    %cst_10 = arith.constant 1.000000e+00 : f32
    %14 = vector.broadcast %cst_10 : f32 to vector<4x128xf32>
    %15 = arith.addf %14, %13 : vector<4x128xf32>
    %cst_11 = arith.constant 1.000000e+00 : f32
    %16 = vector.broadcast %cst_11 : f32 to vector<4x128xf32>
    %17 = arith.divf %16, %15 : vector<4x128xf32>
    %c0_12 = arith.constant 0 : index
    %c0_13 = arith.constant 0 : index
    %c0_14 = arith.constant 0 : index
    %18 = vector.load %arg4[%c0_12, %c0_13, %c0_14] : memref<1x4x128xf32, #tpu.memory_space<vmem>>, vector<1x4x128xf32>
    %19 = vector.shape_cast %18 : vector<1x4x128xf32> to vector<4x128xf32>
    %20 = vector.shape_cast %17 : vector<4x128xf32> to vector<1x4x128xf32>
    tpu.vector_store %arg4[%c0_12, %c0_13, %c0_14], %20 {strides = array<i32>} : memref<1x4x128xf32, #tpu.memory_space<vmem>>, vector<1x4x128xf32>,
    return
  }
  func.func @transform_0(%arg0: i32) -> (i32, i32, i32) {
    %c0_i32 = arith.constant 0 : i32
    %c0_i32_0 = arith.constant 0 : i32
    %c0_i32_1 = arith.constant 0 : i32
    return %arg0, %c0_i32, %c0_i32_0 : i32, i32, i32
  }
  func.func @transform_1(%arg0: i32) -> (i32, i32, i32) {
    %c0_i32 = arith.constant 0 : i32
    %c0_i32_0 = arith.constant 0 : i32
    %c0_i32_1 = arith.constant 0 : i32
    return %arg0, %c0_i32, %c0_i32_0 : i32, i32, i32
  }
  func.func @transform_2(%arg0: i32) -> (i32, i32, i32) {
    %c0_i32 = arith.constant 0 : i32
    %c0_i32_0 = arith.constant 0 : i32
    %c0_i32_1 = arith.constant 0 : i32
    return %arg0, %c0_i32, %c0_i32_0 : i32, i32, i32
  }
  func.func @transform_3(%arg0: i32) -> (i32, i32, i32) {
    %c0_i32 = arith.constant 0 : i32
    %c0_i32_0 = arith.constant 0 : i32
    %c0_i32_1 = arith.constant 0 : i32
    return %arg0, %c0_i32, %c0_i32_0 : i32, i32, i32
  }
}

module attributes {stable_mosaic.version = 11 : i64} {
  func.func @_avgmax_kernel(%arg0: i32, %arg1: memref<32x384xf32, #tpu.memory_space<vmem>>, %arg2: memref<2x384xf32, #tpu.memory_space<vmem>>) attributes {dimension_semantics = [#tpu.dimension_semantics<arbitrary>], iteration_bounds = array<i64: 1>, scalar_prefetch = 0 : i64, scratch_operands = 0 : i64, tpu.core_type = #tpu.core_type<tc>, window_params = [{pipeline_mode = #tpu.pipeline_mode<synchronous>, transform_indices = @transform_0, window_bounds = array<i64: 32, 384>}, {pipeline_mode = #tpu.pipeline_mode<synchronous>, transform_indices = @transform_1, window_bounds = array<i64: 2, 384>}]} {
    %c0 = arith.constant 0 : index
    %c0_0 = arith.constant 0 : index
    %0 = vector.load %arg1[%c0, %c0_0] : memref<32x384xf32, #tpu.memory_space<vmem>>, vector<32x384xf32>
    %cst = arith.constant dense<0.000000e+00> : vector<384xf32>
    %1 = vector.multi_reduction <add>, %0, %cst [0] : vector<32x384xf32> to vector<384xf32>
    %2 = vector.shape_cast %1 : vector<384xf32> to vector<1x384xf32>
    %cst_1 = arith.constant 3.200000e+01 : f32
    %3 = vector.broadcast %cst_1 : f32 to vector<1x384xf32>
    %4 = arith.divf %2, %3 : vector<1x384xf32>
    %cst_2 = arith.constant dense<0xFF800000> : vector<384xf32>
    %5 = vector.multi_reduction <maximumf>, %0, %cst_2 [0] : vector<32x384xf32> to vector<384xf32>
    %6 = vector.shape_cast %5 : vector<384xf32> to vector<1x384xf32>
    %7 = tpu.concatenate %4, %6 in 0 : vector<1x384xf32>, vector<1x384xf32> -> vector<2x384xf32>
    %c0_3 = arith.constant 0 : index
    %c0_4 = arith.constant 0 : index
    %8 = vector.load %arg2[%c0_3, %c0_4] : memref<2x384xf32, #tpu.memory_space<vmem>>, vector<2x384xf32>
    tpu.vector_store %arg2[%c0_3, %c0_4], %7 {strides = array<i32>} : memref<2x384xf32, #tpu.memory_space<vmem>>, vector<2x384xf32>,
    return
  }
  func.func @transform_0(%arg0: i32) -> (i32, i32) {
    %c0_i32 = arith.constant 0 : i32
    %c0_i32_0 = arith.constant 0 : i32
    %c0_i32_1 = arith.constant 0 : i32
    return %c0_i32, %c0_i32_0 : i32, i32
  }
  func.func @transform_1(%arg0: i32) -> (i32, i32) {
    %c0_i32 = arith.constant 0 : i32
    %c0_i32_0 = arith.constant 0 : i32
    %c0_i32_1 = arith.constant 0 : i32
    return %c0_i32, %c0_i32_0 : i32, i32
  }
}

module attributes {stable_mosaic.version = 11 : i64} {
  func.func @_chain_kernel(%arg0: i32, %arg1: memref<1x256x128xbf16, #tpu.memory_space<vmem>>, %arg2: memref<1x128x128xbf16, #tpu.memory_space<vmem>>, %arg3: memref<1x1x128xf32, #tpu.memory_space<vmem>>, %arg4: memref<1x256x128xf32, #tpu.memory_space<vmem>>) attributes {dimension_semantics = [#tpu.dimension_semantics<parallel>], iteration_bounds = array<i64: 3>, scalar_prefetch = 0 : i64, scratch_operands = 0 : i64, tpu.core_type = #tpu.core_type<tc>, window_params = [{transform_indices = @transform_0, window_bounds = array<i64: 1, 256, 128>}, {transform_indices = @transform_1, window_bounds = array<i64: 1, 128, 128>}, {transform_indices = @transform_2, window_bounds = array<i64: 1, 1, 128>}, {transform_indices = @transform_3, window_bounds = array<i64: 1, 256, 128>}]} {
    %c0 = arith.constant 0 : index
    %c0_0 = arith.constant 0 : index
    %c0_1 = arith.constant 0 : index
    %0 = vector.load %arg1[%c0, %c0_0, %c0_1] : memref<1x256x128xbf16, #tpu.memory_space<vmem>>, vector<1x256x128xbf16>
    %1 = vector.shape_cast %0 : vector<1x256x128xbf16> to vector<256x128xbf16>
    %c0_2 = arith.constant 0 : index
    %c0_3 = arith.constant 0 : index
    %c0_4 = arith.constant 0 : index
    %2 = vector.load %arg2[%c0_2, %c0_3, %c0_4] : memref<1x128x128xbf16, #tpu.memory_space<vmem>>, vector<1x128x128xbf16>
    %3 = vector.shape_cast %2 : vector<1x128x128xbf16> to vector<128x128xbf16>
    %c0_5 = arith.constant 0 : index
    %c0_6 = arith.constant 0 : index
    %c0_7 = arith.constant 0 : index
    %4 = vector.load %arg3[%c0_5, %c0_6, %c0_7] : memref<1x1x128xf32, #tpu.memory_space<vmem>>, vector<1x1x128xf32>
    %5 = vector.shape_cast %4 : vector<1x1x128xf32> to vector<1x128xf32>
    %cst = arith.constant dense<0.000000e+00> : vector<256x128xf32>
    %6 = tpu.matmul %1, %3, %cst {dimension_numbers = #tpu.dot_dimension_numbers<[1], [0], [0], [1], [0, 0, 1, 1], [], []>} : vector<256x128xbf16>, vector<128x128xbf16>, vector<256x128xf32> -> vector<256x128xf32>
    %7 = vector.broadcast %5 : vector<1x128xf32> to vector<256x128xf32>
    %8 = arith.addf %6, %7 : vector<256x128xf32>
    %cst_8 = arith.constant 0.000000e+00 : f32
    %9 = vector.broadcast %cst_8 : f32 to vector<256x128xf32>
    %10 = arith.maximumf %8, %9 : vector<256x128xf32>
    %cst_9 = arith.constant 0.000000e+00 : f32
    %11 = vector.broadcast %cst_9 : f32 to vector<256x128xf32>
    %12 = arith.subf %11, %10 : vector<256x128xf32>
    %13 = math.exp %12 : vector<256x128xf32>
    %cst_10 = arith.constant 1.000000e+00 : f32
    %14 = vector.broadcast %cst_10 : f32 to vector<256x128xf32>
    %15 = arith.addf %14, %13 : vector<256x128xf32>
    %cst_11 = arith.constant 1.000000e+00 : f32
    %16 = vector.broadcast %cst_11 : f32 to vector<256x128xf32>
    %17 = arith.divf %16, %15 : vector<256x128xf32>
    %c0_12 = arith.constant 0 : index
    %c0_13 = arith.constant 0 : index
    %c0_14 = arith.constant 0 : index
    %18 = vector.load %arg4[%c0_12, %c0_13, %c0_14] : memref<1x256x128xf32, #tpu.memory_space<vmem>>, vector<1x256x128xf32>
    %19 = vector.shape_cast %18 : vector<1x256x128xf32> to vector<256x128xf32>
    %20 = vector.shape_cast %17 : vector<256x128xf32> to vector<1x256x128xf32>
    tpu.vector_store %arg4[%c0_12, %c0_13, %c0_14], %20 {strides = array<i32>} : memref<1x256x128xf32, #tpu.memory_space<vmem>>, vector<1x256x128xf32>,
    return
  }
  func.func @transform_0(%arg0: i32) -> (i32, i32, i32) {
    %c0_i32 = arith.constant 0 : i32
    %c0_i32_0 = arith.constant 0 : i32
    %c0_i32_1 = arith.constant 0 : i32
    return %arg0, %c0_i32, %c0_i32_0 : i32, i32, i32
  }
  func.func @transform_1(%arg0: i32) -> (i32, i32, i32) {
    %c0_i32 = arith.constant 0 : i32
    %c0_i32_0 = arith.constant 0 : i32
    %c0_i32_1 = arith.constant 0 : i32
    return %arg0, %c0_i32, %c0_i32_0 : i32, i32, i32
  }
  func.func @transform_2(%arg0: i32) -> (i32, i32, i32) {
    %c0_i32 = arith.constant 0 : i32
    %c0_i32_0 = arith.constant 0 : i32
    %c0_i32_1 = arith.constant 0 : i32
    return %arg0, %c0_i32, %c0_i32_0 : i32, i32, i32
  }
  func.func @transform_3(%arg0: i32) -> (i32, i32, i32) {
    %c0_i32 = arith.constant 0 : i32
    %c0_i32_0 = arith.constant 0 : i32
    %c0_i32_1 = arith.constant 0 : i32
    return %arg0, %c0_i32, %c0_i32_0 : i32, i32, i32
  }
}

module attributes {stable_mosaic.version = 11 : i64} {
  func.func @_chain_kernel(%arg0: i32, %arg1: memref<1x128x128xbf16, #tpu.memory_space<vmem>>, %arg2: memref<1x128x128xbf16, #tpu.memory_space<vmem>>, %arg3: memref<1x1x128xf32, #tpu.memory_space<vmem>>, %arg4: memref<1x128x128xbf16, #tpu.memory_space<vmem>>, %arg5: memref<1x1x128xf32, #tpu.memory_space<vmem>>, %arg6: memref<1x128x128xf32, #tpu.memory_space<vmem>>) attributes {dimension_semantics = [#tpu.dimension_semantics<parallel>], iteration_bounds = array<i64: 3>, scalar_prefetch = 0 : i64, scratch_operands = 0 : i64, tpu.core_type = #tpu.core_type<tc>, window_params = [{transform_indices = @transform_0, window_bounds = array<i64: 1, 128, 128>}, {transform_indices = @transform_1, window_bounds = array<i64: 1, 128, 128>}, {transform_indices = @transform_2, window_bounds = array<i64: 1, 1, 128>}, {transform_indices = @transform_3, window_bounds = array<i64: 1, 128, 128>}, {transform_indices = @transform_4, window_bounds = array<i64: 1, 1, 128>}, {transform_indices = @transform_5, window_bounds = array<i64: 1, 128, 128>}]} {
    %c0 = arith.constant 0 : index
    %c0_0 = arith.constant 0 : index
    %c0_1 = arith.constant 0 : index
    %0 = vector.load %arg1[%c0, %c0_0, %c0_1] : memref<1x128x128xbf16, #tpu.memory_space<vmem>>, vector<1x128x128xbf16>
    %1 = vector.shape_cast %0 : vector<1x128x128xbf16> to vector<128x128xbf16>
    %c0_2 = arith.constant 0 : index
    %c0_3 = arith.constant 0 : index
    %c0_4 = arith.constant 0 : index
    %2 = vector.load %arg2[%c0_2, %c0_3, %c0_4] : memref<1x128x128xbf16, #tpu.memory_space<vmem>>, vector<1x128x128xbf16>
    %3 = vector.shape_cast %2 : vector<1x128x128xbf16> to vector<128x128xbf16>
    %c0_5 = arith.constant 0 : index
    %c0_6 = arith.constant 0 : index
    %c0_7 = arith.constant 0 : index
    %4 = vector.load %arg3[%c0_5, %c0_6, %c0_7] : memref<1x1x128xf32, #tpu.memory_space<vmem>>, vector<1x1x128xf32>
    %5 = vector.shape_cast %4 : vector<1x1x128xf32> to vector<1x128xf32>
    %cst = arith.constant dense<0.000000e+00> : vector<128x128xf32>
    %6 = tpu.matmul %1, %3, %cst {dimension_numbers = #tpu.dot_dimension_numbers<[1], [0], [0], [1], [0, 0, 1, 1], [], []>} : vector<128x128xbf16>, vector<128x128xbf16>, vector<128x128xf32> -> vector<128x128xf32>
    %7 = vector.broadcast %5 : vector<1x128xf32> to vector<128x128xf32>
    %8 = arith.addf %6, %7 : vector<128x128xf32>
    %9 = arith.truncf %8 : vector<128x128xf32> to vector<128x128xbf16>
    %c0_8 = arith.constant 0 : index
    %c0_9 = arith.constant 0 : index
    %c0_10 = arith.constant 0 : index
    %10 = vector.load %arg4[%c0_8, %c0_9, %c0_10] : memref<1x128x128xbf16, #tpu.memory_space<vmem>>, vector<1x128x128xbf16>
    %11 = vector.shape_cast %10 : vector<1x128x128xbf16> to vector<128x128xbf16>
    %c0_11 = arith.constant 0 : index
    %c0_12 = arith.constant 0 : index
    %c0_13 = arith.constant 0 : index
    %12 = vector.load %arg5[%c0_11, %c0_12, %c0_13] : memref<1x1x128xf32, #tpu.memory_space<vmem>>, vector<1x1x128xf32>
    %13 = vector.shape_cast %12 : vector<1x1x128xf32> to vector<1x128xf32>
    %cst_14 = arith.constant dense<0.000000e+00> : vector<128x128xf32>
    %14 = tpu.matmul %9, %11, %cst_14 {dimension_numbers = #tpu.dot_dimension_numbers<[1], [0], [0], [1], [0, 0, 1, 1], [], []>} : vector<128x128xbf16>, vector<128x128xbf16>, vector<128x128xf32> -> vector<128x128xf32>
    %15 = vector.broadcast %13 : vector<1x128xf32> to vector<128x128xf32>
    %16 = arith.addf %14, %15 : vector<128x128xf32>
    %c0_15 = arith.constant 0 : index
    %c0_16 = arith.constant 0 : index
    %c0_17 = arith.constant 0 : index
    %17 = vector.load %arg6[%c0_15, %c0_16, %c0_17] : memref<1x128x128xf32, #tpu.memory_space<vmem>>, vector<1x128x128xf32>
    %18 = vector.shape_cast %17 : vector<1x128x128xf32> to vector<128x128xf32>
    %19 = vector.shape_cast %16 : vector<128x128xf32> to vector<1x128x128xf32>
    tpu.vector_store %arg6[%c0_15, %c0_16, %c0_17], %19 {strides = array<i32>} : memref<1x128x128xf32, #tpu.memory_space<vmem>>, vector<1x128x128xf32>,
    return
  }
  func.func @transform_0(%arg0: i32) -> (i32, i32, i32) {
    %c0_i32 = arith.constant 0 : i32
    %c0_i32_0 = arith.constant 0 : i32
    %c0_i32_1 = arith.constant 0 : i32
    return %arg0, %c0_i32, %c0_i32_0 : i32, i32, i32
  }
  func.func @transform_1(%arg0: i32) -> (i32, i32, i32) {
    %c0_i32 = arith.constant 0 : i32
    %c0_i32_0 = arith.constant 0 : i32
    %c0_i32_1 = arith.constant 0 : i32
    return %arg0, %c0_i32, %c0_i32_0 : i32, i32, i32
  }
  func.func @transform_2(%arg0: i32) -> (i32, i32, i32) {
    %c0_i32 = arith.constant 0 : i32
    %c0_i32_0 = arith.constant 0 : i32
    %c0_i32_1 = arith.constant 0 : i32
    return %arg0, %c0_i32, %c0_i32_0 : i32, i32, i32
  }
  func.func @transform_3(%arg0: i32) -> (i32, i32, i32) {
    %c0_i32 = arith.constant 0 : i32
    %c0_i32_0 = arith.constant 0 : i32
    %c0_i32_1 = arith.constant 0 : i32
    return %arg0, %c0_i32, %c0_i32_0 : i32, i32, i32
  }
  func.func @transform_4(%arg0: i32) -> (i32, i32, i32) {
    %c0_i32 = arith.constant 0 : i32
    %c0_i32_0 = arith.constant 0 : i32
    %c0_i32_1 = arith.constant 0 : i32
    return %arg0, %c0_i32, %c0_i32_0 : i32, i32, i32
  }
  func.func @transform_5(%arg0: i32) -> (i32, i32, i32) {
    %c0_i32 = arith.constant 0 : i32
    %c0_i32_0 = arith.constant 0 : i32
    %c0_i32_1 = arith.constant 0 : i32
    return %arg0, %c0_i32, %c0_i32_0 : i32, i32, i32
  }
}

module attributes {stable_mosaic.version = 11 : i64} {
  func.func @_chain_kernel(%arg0: i32, %arg1: memref<1x128x384xbf16, #tpu.memory_space<vmem>>, %arg2: memref<1x384x128xbf16, #tpu.memory_space<vmem>>, %arg3: memref<1x1x128xf32, #tpu.memory_space<vmem>>, %arg4: memref<1x128x128xbf16, #tpu.memory_space<vmem>>, %arg5: memref<1x1x128xf32, #tpu.memory_space<vmem>>, %arg6: memref<1x128x128xbf16, #tpu.memory_space<vmem>>, %arg7: memref<1x1x128xf32, #tpu.memory_space<vmem>>, %arg8: memref<1x128x128xf32, #tpu.memory_space<vmem>>, %arg9: memref<1x128x128xf32, #tpu.memory_space<vmem>>) attributes {dimension_semantics = [#tpu.dimension_semantics<parallel>], iteration_bounds = array<i64: 3>, scalar_prefetch = 0 : i64, scratch_operands = 0 : i64, tpu.core_type = #tpu.core_type<tc>, window_params = [{transform_indices = @transform_0, window_bounds = array<i64: 1, 128, 384>}, {transform_indices = @transform_1, window_bounds = array<i64: 1, 384, 128>}, {transform_indices = @transform_2, window_bounds = array<i64: 1, 1, 128>}, {transform_indices = @transform_3, window_bounds = array<i64: 1, 128, 128>}, {transform_indices = @transform_4, window_bounds = array<i64: 1, 1, 128>}, {transform_indices = @transform_5, window_bounds = array<i64: 1, 128, 128>}, {transform_indices = @transform_6, window_bounds = array<i64: 1, 1, 128>}, {transform_indices = @transform_7, window_bounds = array<i64: 1, 128, 128>}, {transform_indices = @transform_8, window_bounds = array<i64: 1, 128, 128>}]} {
    %c0 = arith.constant 0 : index
    %c0_0 = arith.constant 0 : index
    %c0_1 = arith.constant 0 : index
    %0 = vector.load %arg1[%c0, %c0_0, %c0_1] : memref<1x128x384xbf16, #tpu.memory_space<vmem>>, vector<1x128x384xbf16>
    %1 = vector.shape_cast %0 : vector<1x128x384xbf16> to vector<128x384xbf16>
    %c0_2 = arith.constant 0 : index
    %c0_3 = arith.constant 0 : index
    %c0_4 = arith.constant 0 : index
    %2 = vector.load %arg2[%c0_2, %c0_3, %c0_4] : memref<1x384x128xbf16, #tpu.memory_space<vmem>>, vector<1x384x128xbf16>
    %3 = vector.shape_cast %2 : vector<1x384x128xbf16> to vector<384x128xbf16>
    %c0_5 = arith.constant 0 : index
    %c0_6 = arith.constant 0 : index
    %c0_7 = arith.constant 0 : index
    %4 = vector.load %arg3[%c0_5, %c0_6, %c0_7] : memref<1x1x128xf32, #tpu.memory_space<vmem>>, vector<1x1x128xf32>
    %5 = vector.shape_cast %4 : vector<1x1x128xf32> to vector<1x128xf32>
    %cst = arith.constant dense<0.000000e+00> : vector<128x128xf32>
    %6 = tpu.matmul %1, %3, %cst {dimension_numbers = #tpu.dot_dimension_numbers<[1], [0], [0], [1], [0, 0, 1, 1], [], []>} : vector<128x384xbf16>, vector<384x128xbf16>, vector<128x128xf32> -> vector<128x128xf32>
    %7 = vector.broadcast %5 : vector<1x128xf32> to vector<128x128xf32>
    %8 = arith.addf %6, %7 : vector<128x128xf32>
    %9 = arith.truncf %8 : vector<128x128xf32> to vector<128x128xbf16>
    %c0_8 = arith.constant 0 : index
    %c0_9 = arith.constant 0 : index
    %c0_10 = arith.constant 0 : index
    %10 = vector.load %arg4[%c0_8, %c0_9, %c0_10] : memref<1x128x128xbf16, #tpu.memory_space<vmem>>, vector<1x128x128xbf16>
    %11 = vector.shape_cast %10 : vector<1x128x128xbf16> to vector<128x128xbf16>
    %c0_11 = arith.constant 0 : index
    %c0_12 = arith.constant 0 : index
    %c0_13 = arith.constant 0 : index
    %12 = vector.load %arg5[%c0_11, %c0_12, %c0_13] : memref<1x1x128xf32, #tpu.memory_space<vmem>>, vector<1x1x128xf32>
    %13 = vector.shape_cast %12 : vector<1x1x128xf32> to vector<1x128xf32>
    %cst_14 = arith.constant dense<0.000000e+00> : vector<128x128xf32>
    %14 = tpu.matmul %9, %11, %cst_14 {dimension_numbers = #tpu.dot_dimension_numbers<[1], [0], [0], [1], [0, 0, 1, 1], [], []>} : vector<128x128xbf16>, vector<128x128xbf16>, vector<128x128xf32> -> vector<128x128xf32>
    %15 = vector.broadcast %13 : vector<1x128xf32> to vector<128x128xf32>
    %16 = arith.addf %14, %15 : vector<128x128xf32>
    %c0_15 = arith.constant 0 : index
    %c0_16 = arith.constant 0 : index
    %c0_17 = arith.constant 0 : index
    %17 = vector.load %arg8[%c0_15, %c0_16, %c0_17] : memref<1x128x128xf32, #tpu.memory_space<vmem>>, vector<1x128x128xf32>
    %18 = vector.shape_cast %17 : vector<1x128x128xf32> to vector<128x128xf32>
    %19 = vector.shape_cast %16 : vector<128x128xf32> to vector<1x128x128xf32>
    tpu.vector_store %arg8[%c0_15, %c0_16, %c0_17], %19 {strides = array<i32>} : memref<1x128x128xf32, #tpu.memory_space<vmem>>, vector<1x128x128xf32>,
    %20 = arith.truncf %16 : vector<128x128xf32> to vector<128x128xbf16>
    %c0_18 = arith.constant 0 : index
    %c0_19 = arith.constant 0 : index
    %c0_20 = arith.constant 0 : index
    %21 = vector.load %arg6[%c0_18, %c0_19, %c0_20] : memref<1x128x128xbf16, #tpu.memory_space<vmem>>, vector<1x128x128xbf16>
    %22 = vector.shape_cast %21 : vector<1x128x128xbf16> to vector<128x128xbf16>
    %c0_21 = arith.constant 0 : index
    %c0_22 = arith.constant 0 : index
    %c0_23 = arith.constant 0 : index
    %23 = vector.load %arg7[%c0_21, %c0_22, %c0_23] : memref<1x1x128xf32, #tpu.memory_space<vmem>>, vector<1x1x128xf32>
    %24 = vector.shape_cast %23 : vector<1x1x128xf32> to vector<1x128xf32>
    %cst_24 = arith.constant dense<0.000000e+00> : vector<128x128xf32>
    %25 = tpu.matmul %20, %22, %cst_24 {dimension_numbers = #tpu.dot_dimension_numbers<[1], [0], [0], [1], [0, 0, 1, 1], [], []>} : vector<128x128xbf16>, vector<128x128xbf16>, vector<128x128xf32> -> vector<128x128xf32>
    %26 = vector.broadcast %24 : vector<1x128xf32> to vector<128x128xf32>
    %27 = arith.addf %25, %26 : vector<128x128xf32>
    %c0_25 = arith.constant 0 : index
    %c0_26 = arith.constant 0 : index
    %c0_27 = arith.constant 0 : index
    %28 = vector.load %arg9[%c0_25, %c0_26, %c0_27] : memref<1x128x128xf32, #tpu.memory_space<vmem>>, vector<1x128x128xf32>
    %29 = vector.shape_cast %28 : vector<1x128x128xf32> to vector<128x128xf32>
    %30 = vector.shape_cast %27 : vector<128x128xf32> to vector<1x128x128xf32>
    tpu.vector_store %arg9[%c0_25, %c0_26, %c0_27], %30 {strides = array<i32>} : memref<1x128x128xf32, #tpu.memory_space<vmem>>, vector<1x128x128xf32>,
    return
  }
  func.func @transform_0(%arg0: i32) -> (i32, i32, i32) {
    %c0_i32 = arith.constant 0 : i32
    %c0_i32_0 = arith.constant 0 : i32
    %c0_i32_1 = arith.constant 0 : i32
    return %arg0, %c0_i32, %c0_i32_0 : i32, i32, i32
  }
  func.func @transform_1(%arg0: i32) -> (i32, i32, i32) {
    %c0_i32 = arith.constant 0 : i32
    %c0_i32_0 = arith.constant 0 : i32
    %c0_i32_1 = arith.constant 0 : i32
    return %arg0, %c0_i32, %c0_i32_0 : i32, i32, i32
  }
  func.func @transform_2(%arg0: i32) -> (i32, i32, i32) {
    %c0_i32 = arith.constant 0 : i32
    %c0_i32_0 = arith.constant 0 : i32
    %c0_i32_1 = arith.constant 0 : i32
    return %arg0, %c0_i32, %c0_i32_0 : i32, i32, i32
  }
  func.func @transform_3(%arg0: i32) -> (i32, i32, i32) {
    %c0_i32 = arith.constant 0 : i32
    %c0_i32_0 = arith.constant 0 : i32
    %c0_i32_1 = arith.constant 0 : i32
    return %arg0, %c0_i32, %c0_i32_0 : i32, i32, i32
  }
  func.func @transform_4(%arg0: i32) -> (i32, i32, i32) {
    %c0_i32 = arith.constant 0 : i32
    %c0_i32_0 = arith.constant 0 : i32
    %c0_i32_1 = arith.constant 0 : i32
    return %arg0, %c0_i32, %c0_i32_0 : i32, i32, i32
  }
  func.func @transform_5(%arg0: i32) -> (i32, i32, i32) {
    %c0_i32 = arith.constant 0 : i32
    %c0_i32_0 = arith.constant 0 : i32
    %c0_i32_1 = arith.constant 0 : i32
    return %arg0, %c0_i32, %c0_i32_0 : i32, i32, i32
  }
  func.func @transform_6(%arg0: i32) -> (i32, i32, i32) {
    %c0_i32 = arith.constant 0 : i32
    %c0_i32_0 = arith.constant 0 : i32
    %c0_i32_1 = arith.constant 0 : i32
    return %arg0, %c0_i32, %c0_i32_0 : i32, i32, i32
  }
  func.func @transform_7(%arg0: i32) -> (i32, i32, i32) {
    %c0_i32 = arith.constant 0 : i32
    %c0_i32_0 = arith.constant 0 : i32
    %c0_i32_1 = arith.constant 0 : i32
    return %arg0, %c0_i32, %c0_i32_0 : i32, i32, i32
  }
  func.func @transform_8(%arg0: i32) -> (i32, i32, i32) {
    %c0_i32 = arith.constant 0 : i32
    %c0_i32_0 = arith.constant 0 : i32
    %c0_i32_1 = arith.constant 0 : i32
    return %arg0, %c0_i32, %c0_i32_0 : i32, i32, i32
  }
}

module attributes {stable_mosaic.version = 11 : i64} {
  func.func @_chain_kernel(%arg0: i32, %arg1: memref<1x128x128xbf16, #tpu.memory_space<vmem>>, %arg2: memref<1x128x128xbf16, #tpu.memory_space<vmem>>, %arg3: memref<1x1x128xf32, #tpu.memory_space<vmem>>, %arg4: memref<1x128x128xf32, #tpu.memory_space<vmem>>) attributes {dimension_semantics = [#tpu.dimension_semantics<parallel>], iteration_bounds = array<i64: 3>, scalar_prefetch = 0 : i64, scratch_operands = 0 : i64, tpu.core_type = #tpu.core_type<tc>, window_params = [{transform_indices = @transform_0, window_bounds = array<i64: 1, 128, 128>}, {transform_indices = @transform_1, window_bounds = array<i64: 1, 128, 128>}, {transform_indices = @transform_2, window_bounds = array<i64: 1, 1, 128>}, {transform_indices = @transform_3, window_bounds = array<i64: 1, 128, 128>}]} {
    %c0 = arith.constant 0 : index
    %c0_0 = arith.constant 0 : index
    %c0_1 = arith.constant 0 : index
    %0 = vector.load %arg1[%c0, %c0_0, %c0_1] : memref<1x128x128xbf16, #tpu.memory_space<vmem>>, vector<1x128x128xbf16>
    %1 = vector.shape_cast %0 : vector<1x128x128xbf16> to vector<128x128xbf16>
    %c0_2 = arith.constant 0 : index
    %c0_3 = arith.constant 0 : index
    %c0_4 = arith.constant 0 : index
    %2 = vector.load %arg2[%c0_2, %c0_3, %c0_4] : memref<1x128x128xbf16, #tpu.memory_space<vmem>>, vector<1x128x128xbf16>
    %3 = vector.shape_cast %2 : vector<1x128x128xbf16> to vector<128x128xbf16>
    %c0_5 = arith.constant 0 : index
    %c0_6 = arith.constant 0 : index
    %c0_7 = arith.constant 0 : index
    %4 = vector.load %arg3[%c0_5, %c0_6, %c0_7] : memref<1x1x128xf32, #tpu.memory_space<vmem>>, vector<1x1x128xf32>
    %5 = vector.shape_cast %4 : vector<1x1x128xf32> to vector<1x128xf32>
    %cst = arith.constant dense<0.000000e+00> : vector<128x128xf32>
    %6 = tpu.matmul %1, %3, %cst {dimension_numbers = #tpu.dot_dimension_numbers<[1], [0], [0], [1], [0, 0, 1, 1], [], []>} : vector<128x128xbf16>, vector<128x128xbf16>, vector<128x128xf32> -> vector<128x128xf32>
    %7 = vector.broadcast %5 : vector<1x128xf32> to vector<128x128xf32>
    %8 = arith.addf %6, %7 : vector<128x128xf32>
    %c0_8 = arith.constant 0 : index
    %c0_9 = arith.constant 0 : index
    %c0_10 = arith.constant 0 : index
    %9 = vector.load %arg4[%c0_8, %c0_9, %c0_10] : memref<1x128x128xf32, #tpu.memory_space<vmem>>, vector<1x128x128xf32>
    %10 = vector.shape_cast %9 : vector<1x128x128xf32> to vector<128x128xf32>
    %11 = vector.shape_cast %8 : vector<128x128xf32> to vector<1x128x128xf32>
    tpu.vector_store %arg4[%c0_8, %c0_9, %c0_10], %11 {strides = array<i32>} : memref<1x128x128xf32, #tpu.memory_space<vmem>>, vector<1x128x128xf32>,
    return
  }
  func.func @transform_0(%arg0: i32) -> (i32, i32, i32) {
    %c0_i32 = arith.constant 0 : i32
    %c0_i32_0 = arith.constant 0 : i32
    %c0_i32_1 = arith.constant 0 : i32
    return %arg0, %c0_i32, %c0_i32_0 : i32, i32, i32
  }
  func.func @transform_1(%arg0: i32) -> (i32, i32, i32) {
    %c0_i32 = arith.constant 0 : i32
    %c0_i32_0 = arith.constant 0 : i32
    %c0_i32_1 = arith.constant 0 : i32
    return %arg0, %c0_i32, %c0_i32_0 : i32, i32, i32
  }
  func.func @transform_2(%arg0: i32) -> (i32, i32, i32) {
    %c0_i32 = arith.constant 0 : i32
    %c0_i32_0 = arith.constant 0 : i32
    %c0_i32_1 = arith.constant 0 : i32
    return %arg0, %c0_i32, %c0_i32_0 : i32, i32, i32
  }
  func.func @transform_3(%arg0: i32) -> (i32, i32, i32) {
    %c0_i32 = arith.constant 0 : i32
    %c0_i32_0 = arith.constant 0 : i32
    %c0_i32_1 = arith.constant 0 : i32
    return %arg0, %c0_i32, %c0_i32_0 : i32, i32, i32
  }
}

module attributes {stable_mosaic.version = 11 : i64} {
  func.func @_chain_kernel(%arg0: i32, %arg1: memref<1x128x128xbf16, #tpu.memory_space<vmem>>, %arg2: memref<1x128x128xbf16, #tpu.memory_space<vmem>>, %arg3: memref<1x1x128xf32, #tpu.memory_space<vmem>>, %arg4: memref<1x128x128xbf16, #tpu.memory_space<vmem>>, %arg5: memref<1x1x128xf32, #tpu.memory_space<vmem>>, %arg6: memref<1x128x128xbf16, #tpu.memory_space<vmem>>, %arg7: memref<1x1x128xf32, #tpu.memory_space<vmem>>, %arg8: memref<1x128x128xf32, #tpu.memory_space<vmem>>, %arg9: memref<1x128x128xf32, #tpu.memory_space<vmem>>) attributes {dimension_semantics = [#tpu.dimension_semantics<parallel>], iteration_bounds = array<i64: 3>, scalar_prefetch = 0 : i64, scratch_operands = 0 : i64, tpu.core_type = #tpu.core_type<tc>, window_params = [{transform_indices = @transform_0, window_bounds = array<i64: 1, 128, 128>}, {transform_indices = @transform_1, window_bounds = array<i64: 1, 128, 128>}, {transform_indices = @transform_2, window_bounds = array<i64: 1, 1, 128>}, {transform_indices = @transform_3, window_bounds = array<i64: 1, 128, 128>}, {transform_indices = @transform_4, window_bounds = array<i64: 1, 1, 128>}, {transform_indices = @transform_5, window_bounds = array<i64: 1, 128, 128>}, {transform_indices = @transform_6, window_bounds = array<i64: 1, 1, 128>}, {transform_indices = @transform_7, window_bounds = array<i64: 1, 128, 128>}, {transform_indices = @transform_8, window_bounds = array<i64: 1, 128, 128>}]} {
    %c0 = arith.constant 0 : index
    %c0_0 = arith.constant 0 : index
    %c0_1 = arith.constant 0 : index
    %0 = vector.load %arg1[%c0, %c0_0, %c0_1] : memref<1x128x128xbf16, #tpu.memory_space<vmem>>, vector<1x128x128xbf16>
    %1 = vector.shape_cast %0 : vector<1x128x128xbf16> to vector<128x128xbf16>
    %c0_2 = arith.constant 0 : index
    %c0_3 = arith.constant 0 : index
    %c0_4 = arith.constant 0 : index
    %2 = vector.load %arg2[%c0_2, %c0_3, %c0_4] : memref<1x128x128xbf16, #tpu.memory_space<vmem>>, vector<1x128x128xbf16>
    %3 = vector.shape_cast %2 : vector<1x128x128xbf16> to vector<128x128xbf16>
    %c0_5 = arith.constant 0 : index
    %c0_6 = arith.constant 0 : index
    %c0_7 = arith.constant 0 : index
    %4 = vector.load %arg3[%c0_5, %c0_6, %c0_7] : memref<1x1x128xf32, #tpu.memory_space<vmem>>, vector<1x1x128xf32>
    %5 = vector.shape_cast %4 : vector<1x1x128xf32> to vector<1x128xf32>
    %cst = arith.constant dense<0.000000e+00> : vector<128x128xf32>
    %6 = tpu.matmul %1, %3, %cst {dimension_numbers = #tpu.dot_dimension_numbers<[1], [0], [0], [1], [0, 0, 1, 1], [], []>} : vector<128x128xbf16>, vector<128x128xbf16>, vector<128x128xf32> -> vector<128x128xf32>
    %7 = vector.broadcast %5 : vector<1x128xf32> to vector<128x128xf32>
    %8 = arith.addf %6, %7 : vector<128x128xf32>
    %9 = arith.truncf %8 : vector<128x128xf32> to vector<128x128xbf16>
    %c0_8 = arith.constant 0 : index
    %c0_9 = arith.constant 0 : index
    %c0_10 = arith.constant 0 : index
    %10 = vector.load %arg4[%c0_8, %c0_9, %c0_10] : memref<1x128x128xbf16, #tpu.memory_space<vmem>>, vector<1x128x128xbf16>
    %11 = vector.shape_cast %10 : vector<1x128x128xbf16> to vector<128x128xbf16>
    %c0_11 = arith.constant 0 : index
    %c0_12 = arith.constant 0 : index
    %c0_13 = arith.constant 0 : index
    %12 = vector.load %arg5[%c0_11, %c0_12, %c0_13] : memref<1x1x128xf32, #tpu.memory_space<vmem>>, vector<1x1x128xf32>
    %13 = vector.shape_cast %12 : vector<1x1x128xf32> to vector<1x128xf32>
    %cst_14 = arith.constant dense<0.000000e+00> : vector<128x128xf32>
    %14 = tpu.matmul %9, %11, %cst_14 {dimension_numbers = #tpu.dot_dimension_numbers<[1], [0], [0], [1], [0, 0, 1, 1], [], []>} : vector<128x128xbf16>, vector<128x128xbf16>, vector<128x128xf32> -> vector<128x128xf32>
    %15 = vector.broadcast %13 : vector<1x128xf32> to vector<128x128xf32>
    %16 = arith.addf %14, %15 : vector<128x128xf32>
    %c0_15 = arith.constant 0 : index
    %c0_16 = arith.constant 0 : index
    %c0_17 = arith.constant 0 : index
    %17 = vector.load %arg8[%c0_15, %c0_16, %c0_17] : memref<1x128x128xf32, #tpu.memory_space<vmem>>, vector<1x128x128xf32>
    %18 = vector.shape_cast %17 : vector<1x128x128xf32> to vector<128x128xf32>
    %19 = vector.shape_cast %16 : vector<128x128xf32> to vector<1x128x128xf32>
    tpu.vector_store %arg8[%c0_15, %c0_16, %c0_17], %19 {strides = array<i32>} : memref<1x128x128xf32, #tpu.memory_space<vmem>>, vector<1x128x128xf32>,
    %20 = arith.truncf %16 : vector<128x128xf32> to vector<128x128xbf16>
    %c0_18 = arith.constant 0 : index
    %c0_19 = arith.constant 0 : index
    %c0_20 = arith.constant 0 : index
    %21 = vector.load %arg6[%c0_18, %c0_19, %c0_20] : memref<1x128x128xbf16, #tpu.memory_space<vmem>>, vector<1x128x128xbf16>
    %22 = vector.shape_cast %21 : vector<1x128x128xbf16> to vector<128x128xbf16>
    %c0_21 = arith.constant 0 : index
    %c0_22 = arith.constant 0 : index
    %c0_23 = arith.constant 0 : index
    %23 = vector.load %arg7[%c0_21, %c0_22, %c0_23] : memref<1x1x128xf32, #tpu.memory_space<vmem>>, vector<1x1x128xf32>
    %24 = vector.shape_cast %23 : vector<1x1x128xf32> to vector<1x128xf32>
    %cst_24 = arith.constant dense<0.000000e+00> : vector<128x128xf32>
    %25 = tpu.matmul %20, %22, %cst_24 {dimension_numbers = #tpu.dot_dimension_numbers<[1], [0], [0], [1], [0, 0, 1, 1], [], []>} : vector<128x128xbf16>, vector<128x128xbf16>, vector<128x128xf32> -> vector<128x128xf32>
    %26 = vector.broadcast %24 : vector<1x128xf32> to vector<128x128xf32>
    %27 = arith.addf %25, %26 : vector<128x128xf32>
    %c0_25 = arith.constant 0 : index
    %c0_26 = arith.constant 0 : index
    %c0_27 = arith.constant 0 : index
    %28 = vector.load %arg9[%c0_25, %c0_26, %c0_27] : memref<1x128x128xf32, #tpu.memory_space<vmem>>, vector<1x128x128xf32>
    %29 = vector.shape_cast %28 : vector<1x128x128xf32> to vector<128x128xf32>
    %30 = vector.shape_cast %27 : vector<128x128xf32> to vector<1x128x128xf32>
    tpu.vector_store %arg9[%c0_25, %c0_26, %c0_27], %30 {strides = array<i32>} : memref<1x128x128xf32, #tpu.memory_space<vmem>>, vector<1x128x128xf32>,
    return
  }
  func.func @transform_0(%arg0: i32) -> (i32, i32, i32) {
    %c0_i32 = arith.constant 0 : i32
    %c0_i32_0 = arith.constant 0 : i32
    %c0_i32_1 = arith.constant 0 : i32
    return %arg0, %c0_i32, %c0_i32_0 : i32, i32, i32
  }
  func.func @transform_1(%arg0: i32) -> (i32, i32, i32) {
    %c0_i32 = arith.constant 0 : i32
    %c0_i32_0 = arith.constant 0 : i32
    %c0_i32_1 = arith.constant 0 : i32
    return %arg0, %c0_i32, %c0_i32_0 : i32, i32, i32
  }
  func.func @transform_2(%arg0: i32) -> (i32, i32, i32) {
    %c0_i32 = arith.constant 0 : i32
    %c0_i32_0 = arith.constant 0 : i32
    %c0_i32_1 = arith.constant 0 : i32
    return %arg0, %c0_i32, %c0_i32_0 : i32, i32, i32
  }
  func.func @transform_3(%arg0: i32) -> (i32, i32, i32) {
    %c0_i32 = arith.constant 0 : i32
    %c0_i32_0 = arith.constant 0 : i32
    %c0_i32_1 = arith.constant 0 : i32
    return %arg0, %c0_i32, %c0_i32_0 : i32, i32, i32
  }
  func.func @transform_4(%arg0: i32) -> (i32, i32, i32) {
    %c0_i32 = arith.constant 0 : i32
    %c0_i32_0 = arith.constant 0 : i32
    %c0_i32_1 = arith.constant 0 : i32
    return %arg0, %c0_i32, %c0_i32_0 : i32, i32, i32
  }
  func.func @transform_5(%arg0: i32) -> (i32, i32, i32) {
    %c0_i32 = arith.constant 0 : i32
    %c0_i32_0 = arith.constant 0 : i32
    %c0_i32_1 = arith.constant 0 : i32
    return %arg0, %c0_i32, %c0_i32_0 : i32, i32, i32
  }
  func.func @transform_6(%arg0: i32) -> (i32, i32, i32) {
    %c0_i32 = arith.constant 0 : i32
    %c0_i32_0 = arith.constant 0 : i32
    %c0_i32_1 = arith.constant 0 : i32
    return %arg0, %c0_i32, %c0_i32_0 : i32, i32, i32
  }
  func.func @transform_7(%arg0: i32) -> (i32, i32, i32) {
    %c0_i32 = arith.constant 0 : i32
    %c0_i32_0 = arith.constant 0 : i32
    %c0_i32_1 = arith.constant 0 : i32
    return %arg0, %c0_i32, %c0_i32_0 : i32, i32, i32
  }
  func.func @transform_8(%arg0: i32) -> (i32, i32, i32) {
    %c0_i32 = arith.constant 0 : i32
    %c0_i32_0 = arith.constant 0 : i32
    %c0_i32_1 = arith.constant 0 : i32
    return %arg0, %c0_i32, %c0_i32_0 : i32, i32, i32
  }
}

module attributes {stable_mosaic.version = 11 : i64} {
  func.func @_chain_kernel(%arg0: i32, %arg1: memref<1x128x128xbf16, #tpu.memory_space<vmem>>, %arg2: memref<1x128x256xbf16, #tpu.memory_space<vmem>>, %arg3: memref<1x1x256xf32, #tpu.memory_space<vmem>>, %arg4: memref<1x256x128xbf16, #tpu.memory_space<vmem>>, %arg5: memref<1x1x128xf32, #tpu.memory_space<vmem>>, %arg6: memref<1x128x256xf32, #tpu.memory_space<vmem>>, %arg7: memref<1x128x128xf32, #tpu.memory_space<vmem>>) attributes {dimension_semantics = [#tpu.dimension_semantics<parallel>], iteration_bounds = array<i64: 3>, scalar_prefetch = 0 : i64, scratch_operands = 0 : i64, tpu.core_type = #tpu.core_type<tc>, window_params = [{transform_indices = @transform_0, window_bounds = array<i64: 1, 128, 128>}, {transform_indices = @transform_1, window_bounds = array<i64: 1, 128, 256>}, {transform_indices = @transform_2, window_bounds = array<i64: 1, 1, 256>}, {transform_indices = @transform_3, window_bounds = array<i64: 1, 256, 128>}, {transform_indices = @transform_4, window_bounds = array<i64: 1, 1, 128>}, {transform_indices = @transform_5, window_bounds = array<i64: 1, 128, 256>}, {transform_indices = @transform_6, window_bounds = array<i64: 1, 128, 128>}]} {
    %c0 = arith.constant 0 : index
    %c0_0 = arith.constant 0 : index
    %c0_1 = arith.constant 0 : index
    %0 = vector.load %arg1[%c0, %c0_0, %c0_1] : memref<1x128x128xbf16, #tpu.memory_space<vmem>>, vector<1x128x128xbf16>
    %1 = vector.shape_cast %0 : vector<1x128x128xbf16> to vector<128x128xbf16>
    %c0_2 = arith.constant 0 : index
    %c0_3 = arith.constant 0 : index
    %c0_4 = arith.constant 0 : index
    %2 = vector.load %arg2[%c0_2, %c0_3, %c0_4] : memref<1x128x256xbf16, #tpu.memory_space<vmem>>, vector<1x128x256xbf16>
    %3 = vector.shape_cast %2 : vector<1x128x256xbf16> to vector<128x256xbf16>
    %c0_5 = arith.constant 0 : index
    %c0_6 = arith.constant 0 : index
    %c0_7 = arith.constant 0 : index
    %4 = vector.load %arg3[%c0_5, %c0_6, %c0_7] : memref<1x1x256xf32, #tpu.memory_space<vmem>>, vector<1x1x256xf32>
    %5 = vector.shape_cast %4 : vector<1x1x256xf32> to vector<1x256xf32>
    %cst = arith.constant dense<0.000000e+00> : vector<128x256xf32>
    %6 = tpu.matmul %1, %3, %cst {dimension_numbers = #tpu.dot_dimension_numbers<[1], [0], [0], [1], [0, 0, 1, 1], [], []>} : vector<128x128xbf16>, vector<128x256xbf16>, vector<128x256xf32> -> vector<128x256xf32>
    %7 = vector.broadcast %5 : vector<1x256xf32> to vector<128x256xf32>
    %8 = arith.addf %6, %7 : vector<128x256xf32>
    %c0_8 = arith.constant 0 : index
    %c0_9 = arith.constant 0 : index
    %c0_10 = arith.constant 0 : index
    %9 = vector.load %arg6[%c0_8, %c0_9, %c0_10] : memref<1x128x256xf32, #tpu.memory_space<vmem>>, vector<1x128x256xf32>
    %10 = vector.shape_cast %9 : vector<1x128x256xf32> to vector<128x256xf32>
    %11 = vector.shape_cast %8 : vector<128x256xf32> to vector<1x128x256xf32>
    tpu.vector_store %arg6[%c0_8, %c0_9, %c0_10], %11 {strides = array<i32>} : memref<1x128x256xf32, #tpu.memory_space<vmem>>, vector<1x128x256xf32>,
    %12 = arith.truncf %8 : vector<128x256xf32> to vector<128x256xbf16>
    %c0_11 = arith.constant 0 : index
    %c0_12 = arith.constant 0 : index
    %c0_13 = arith.constant 0 : index
    %13 = vector.load %arg4[%c0_11, %c0_12, %c0_13] : memref<1x256x128xbf16, #tpu.memory_space<vmem>>, vector<1x256x128xbf16>
    %14 = vector.shape_cast %13 : vector<1x256x128xbf16> to vector<256x128xbf16>
    %c0_14 = arith.constant 0 : index
    %c0_15 = arith.constant 0 : index
    %c0_16 = arith.constant 0 : index
    %15 = vector.load %arg5[%c0_14, %c0_15, %c0_16] : memref<1x1x128xf32, #tpu.memory_space<vmem>>, vector<1x1x128xf32>
    %16 = vector.shape_cast %15 : vector<1x1x128xf32> to vector<1x128xf32>
    %cst_17 = arith.constant dense<0.000000e+00> : vector<128x128xf32>
    %17 = tpu.matmul %12, %14, %cst_17 {dimension_numbers = #tpu.dot_dimension_numbers<[1], [0], [0], [1], [0, 0, 1, 1], [], []>} : vector<128x256xbf16>, vector<256x128xbf16>, vector<128x128xf32> -> vector<128x128xf32>
    %18 = vector.broadcast %16 : vector<1x128xf32> to vector<128x128xf32>
    %19 = arith.addf %17, %18 : vector<128x128xf32>
    %c0_18 = arith.constant 0 : index
    %c0_19 = arith.constant 0 : index
    %c0_20 = arith.constant 0 : index
    %20 = vector.load %arg7[%c0_18, %c0_19, %c0_20] : memref<1x128x128xf32, #tpu.memory_space<vmem>>, vector<1x128x128xf32>
    %21 = vector.shape_cast %20 : vector<1x128x128xf32> to vector<128x128xf32>
    %22 = vector.shape_cast %19 : vector<128x128xf32> to vector<1x128x128xf32>
    tpu.vector_store %arg7[%c0_18, %c0_19, %c0_20], %22 {strides = array<i32>} : memref<1x128x128xf32, #tpu.memory_space<vmem>>, vector<1x128x128xf32>,
    return
  }
  func.func @transform_0(%arg0: i32) -> (i32, i32, i32) {
    %c0_i32 = arith.constant 0 : i32
    %c0_i32_0 = arith.constant 0 : i32
    %c0_i32_1 = arith.constant 0 : i32
    return %arg0, %c0_i32, %c0_i32_0 : i32, i32, i32
  }
  func.func @transform_1(%arg0: i32) -> (i32, i32, i32) {
    %c0_i32 = arith.constant 0 : i32
    %c0_i32_0 = arith.constant 0 : i32
    %c0_i32_1 = arith.constant 0 : i32
    return %arg0, %c0_i32, %c0_i32_0 : i32, i32, i32
  }
  func.func @transform_2(%arg0: i32) -> (i32, i32, i32) {
    %c0_i32 = arith.constant 0 : i32
    %c0_i32_0 = arith.constant 0 : i32
    %c0_i32_1 = arith.constant 0 : i32
    return %arg0, %c0_i32, %c0_i32_0 : i32, i32, i32
  }
  func.func @transform_3(%arg0: i32) -> (i32, i32, i32) {
    %c0_i32 = arith.constant 0 : i32
    %c0_i32_0 = arith.constant 0 : i32
    %c0_i32_1 = arith.constant 0 : i32
    return %arg0, %c0_i32, %c0_i32_0 : i32, i32, i32
  }
  func.func @transform_4(%arg0: i32) -> (i32, i32, i32) {
    %c0_i32 = arith.constant 0 : i32
    %c0_i32_0 = arith.constant 0 : i32
    %c0_i32_1 = arith.constant 0 : i32
    return %arg0, %c0_i32, %c0_i32_0 : i32, i32, i32
  }
  func.func @transform_5(%arg0: i32) -> (i32, i32, i32) {
    %c0_i32 = arith.constant 0 : i32
    %c0_i32_0 = arith.constant 0 : i32
    %c0_i32_1 = arith.constant 0 : i32
    return %arg0, %c0_i32, %c0_i32_0 : i32, i32, i32
  }
  func.func @transform_6(%arg0: i32) -> (i32, i32, i32) {
    %c0_i32 = arith.constant 0 : i32
    %c0_i32_0 = arith.constant 0 : i32
    %c0_i32_1 = arith.constant 0 : i32
    return %arg0, %c0_i32, %c0_i32_0 : i32, i32, i32
  }
}

module attributes {stable_mosaic.version = 11 : i64} {
  func.func @_chain_kernel(%arg0: i32, %arg1: memref<1x128x512xbf16, #tpu.memory_space<vmem>>, %arg2: memref<1x512x128xbf16, #tpu.memory_space<vmem>>, %arg3: memref<1x1x128xf32, #tpu.memory_space<vmem>>, %arg4: memref<1x128x128xf32, #tpu.memory_space<vmem>>) attributes {dimension_semantics = [#tpu.dimension_semantics<parallel>], iteration_bounds = array<i64: 3>, scalar_prefetch = 0 : i64, scratch_operands = 0 : i64, tpu.core_type = #tpu.core_type<tc>, window_params = [{transform_indices = @transform_0, window_bounds = array<i64: 1, 128, 512>}, {transform_indices = @transform_1, window_bounds = array<i64: 1, 512, 128>}, {transform_indices = @transform_2, window_bounds = array<i64: 1, 1, 128>}, {transform_indices = @transform_3, window_bounds = array<i64: 1, 128, 128>}]} {
    %c0 = arith.constant 0 : index
    %c0_0 = arith.constant 0 : index
    %c0_1 = arith.constant 0 : index
    %0 = vector.load %arg1[%c0, %c0_0, %c0_1] : memref<1x128x512xbf16, #tpu.memory_space<vmem>>, vector<1x128x512xbf16>
    %1 = vector.shape_cast %0 : vector<1x128x512xbf16> to vector<128x512xbf16>
    %c0_2 = arith.constant 0 : index
    %c0_3 = arith.constant 0 : index
    %c0_4 = arith.constant 0 : index
    %2 = vector.load %arg2[%c0_2, %c0_3, %c0_4] : memref<1x512x128xbf16, #tpu.memory_space<vmem>>, vector<1x512x128xbf16>
    %3 = vector.shape_cast %2 : vector<1x512x128xbf16> to vector<512x128xbf16>
    %c0_5 = arith.constant 0 : index
    %c0_6 = arith.constant 0 : index
    %c0_7 = arith.constant 0 : index
    %4 = vector.load %arg3[%c0_5, %c0_6, %c0_7] : memref<1x1x128xf32, #tpu.memory_space<vmem>>, vector<1x1x128xf32>
    %5 = vector.shape_cast %4 : vector<1x1x128xf32> to vector<1x128xf32>
    %cst = arith.constant dense<0.000000e+00> : vector<128x128xf32>
    %6 = tpu.matmul %1, %3, %cst {dimension_numbers = #tpu.dot_dimension_numbers<[1], [0], [0], [1], [0, 0, 1, 1], [], []>} : vector<128x512xbf16>, vector<512x128xbf16>, vector<128x128xf32> -> vector<128x128xf32>
    %7 = vector.broadcast %5 : vector<1x128xf32> to vector<128x128xf32>
    %8 = arith.addf %6, %7 : vector<128x128xf32>
    %c0_8 = arith.constant 0 : index
    %c0_9 = arith.constant 0 : index
    %c0_10 = arith.constant 0 : index
    %9 = vector.load %arg4[%c0_8, %c0_9, %c0_10] : memref<1x128x128xf32, #tpu.memory_space<vmem>>, vector<1x128x128xf32>
    %10 = vector.shape_cast %9 : vector<1x128x128xf32> to vector<128x128xf32>
    %11 = vector.shape_cast %8 : vector<128x128xf32> to vector<1x128x128xf32>
    tpu.vector_store %arg4[%c0_8, %c0_9, %c0_10], %11 {strides = array<i32>} : memref<1x128x128xf32, #tpu.memory_space<vmem>>, vector<1x128x128xf32>,
    return
  }
  func.func @transform_0(%arg0: i32) -> (i32, i32, i32) {
    %c0_i32 = arith.constant 0 : i32
    %c0_i32_0 = arith.constant 0 : i32
    %c0_i32_1 = arith.constant 0 : i32
    return %arg0, %c0_i32, %c0_i32_0 : i32, i32, i32
  }
  func.func @transform_1(%arg0: i32) -> (i32, i32, i32) {
    %c0_i32 = arith.constant 0 : i32
    %c0_i32_0 = arith.constant 0 : i32
    %c0_i32_1 = arith.constant 0 : i32
    return %arg0, %c0_i32, %c0_i32_0 : i32, i32, i32
  }
  func.func @transform_2(%arg0: i32) -> (i32, i32, i32) {
    %c0_i32 = arith.constant 0 : i32
    %c0_i32_0 = arith.constant 0 : i32
    %c0_i32_1 = arith.constant 0 : i32
    return %arg0, %c0_i32, %c0_i32_0 : i32, i32, i32
  }
  func.func @transform_3(%arg0: i32) -> (i32, i32, i32) {
    %c0_i32 = arith.constant 0 : i32
    %c0_i32_0 = arith.constant 0 : i32
    %c0_i32_1 = arith.constant 0 : i32
    return %arg0, %c0_i32, %c0_i32_0 : i32, i32, i32
  }
}

module attributes {stable_mosaic.version = 11 : i64} {
  func.func @_chain_kernel(%arg0: i32, %arg1: memref<1x128x896xbf16, #tpu.memory_space<vmem>>, %arg2: memref<1x896x128xbf16, #tpu.memory_space<vmem>>, %arg3: memref<1x1x128xf32, #tpu.memory_space<vmem>>, %arg4: memref<1x128x128xbf16, #tpu.memory_space<vmem>>, %arg5: memref<1x1x128xf32, #tpu.memory_space<vmem>>, %arg6: memref<1x128x128xf32, #tpu.memory_space<vmem>>) attributes {dimension_semantics = [#tpu.dimension_semantics<parallel>], iteration_bounds = array<i64: 3>, scalar_prefetch = 0 : i64, scratch_operands = 0 : i64, tpu.core_type = #tpu.core_type<tc>, window_params = [{transform_indices = @transform_0, window_bounds = array<i64: 1, 128, 896>}, {transform_indices = @transform_1, window_bounds = array<i64: 1, 896, 128>}, {transform_indices = @transform_2, window_bounds = array<i64: 1, 1, 128>}, {transform_indices = @transform_3, window_bounds = array<i64: 1, 128, 128>}, {transform_indices = @transform_4, window_bounds = array<i64: 1, 1, 128>}, {transform_indices = @transform_5, window_bounds = array<i64: 1, 128, 128>}]} {
    %c0 = arith.constant 0 : index
    %c0_0 = arith.constant 0 : index
    %c0_1 = arith.constant 0 : index
    %0 = vector.load %arg1[%c0, %c0_0, %c0_1] : memref<1x128x896xbf16, #tpu.memory_space<vmem>>, vector<1x128x896xbf16>
    %1 = vector.shape_cast %0 : vector<1x128x896xbf16> to vector<128x896xbf16>
    %c0_2 = arith.constant 0 : index
    %c0_3 = arith.constant 0 : index
    %c0_4 = arith.constant 0 : index
    %2 = vector.load %arg2[%c0_2, %c0_3, %c0_4] : memref<1x896x128xbf16, #tpu.memory_space<vmem>>, vector<1x896x128xbf16>
    %3 = vector.shape_cast %2 : vector<1x896x128xbf16> to vector<896x128xbf16>
    %c0_5 = arith.constant 0 : index
    %c0_6 = arith.constant 0 : index
    %c0_7 = arith.constant 0 : index
    %4 = vector.load %arg3[%c0_5, %c0_6, %c0_7] : memref<1x1x128xf32, #tpu.memory_space<vmem>>, vector<1x1x128xf32>
    %5 = vector.shape_cast %4 : vector<1x1x128xf32> to vector<1x128xf32>
    %cst = arith.constant dense<0.000000e+00> : vector<128x128xf32>
    %6 = tpu.matmul %1, %3, %cst {dimension_numbers = #tpu.dot_dimension_numbers<[1], [0], [0], [1], [0, 0, 1, 1], [], []>} : vector<128x896xbf16>, vector<896x128xbf16>, vector<128x128xf32> -> vector<128x128xf32>
    %7 = vector.broadcast %5 : vector<1x128xf32> to vector<128x128xf32>
    %8 = arith.addf %6, %7 : vector<128x128xf32>
    %9 = arith.truncf %8 : vector<128x128xf32> to vector<128x128xbf16>
    %c0_8 = arith.constant 0 : index
    %c0_9 = arith.constant 0 : index
    %c0_10 = arith.constant 0 : index
    %10 = vector.load %arg4[%c0_8, %c0_9, %c0_10] : memref<1x128x128xbf16, #tpu.memory_space<vmem>>, vector<1x128x128xbf16>
    %11 = vector.shape_cast %10 : vector<1x128x128xbf16> to vector<128x128xbf16>
    %c0_11 = arith.constant 0 : index
    %c0_12 = arith.constant 0 : index
    %c0_13 = arith.constant 0 : index
    %12 = vector.load %arg5[%c0_11, %c0_12, %c0_13] : memref<1x1x128xf32, #tpu.memory_space<vmem>>, vector<1x1x128xf32>
    %13 = vector.shape_cast %12 : vector<1x1x128xf32> to vector<1x128xf32>
    %cst_14 = arith.constant dense<0.000000e+00> : vector<128x128xf32>
    %14 = tpu.matmul %9, %11, %cst_14 {dimension_numbers = #tpu.dot_dimension_numbers<[1], [0], [0], [1], [0, 0, 1, 1], [], []>} : vector<128x128xbf16>, vector<128x128xbf16>, vector<128x128xf32> -> vector<128x128xf32>
    %15 = vector.broadcast %13 : vector<1x128xf32> to vector<128x128xf32>
    %16 = arith.addf %14, %15 : vector<128x128xf32>
    %c0_15 = arith.constant 0 : index
    %c0_16 = arith.constant 0 : index
    %c0_17 = arith.constant 0 : index
    %17 = vector.load %arg6[%c0_15, %c0_16, %c0_17] : memref<1x128x128xf32, #tpu.memory_space<vmem>>, vector<1x128x128xf32>
    %18 = vector.shape_cast %17 : vector<1x128x128xf32> to vector<128x128xf32>
    %19 = vector.shape_cast %16 : vector<128x128xf32> to vector<1x128x128xf32>
    tpu.vector_store %arg6[%c0_15, %c0_16, %c0_17], %19 {strides = array<i32>} : memref<1x128x128xf32, #tpu.memory_space<vmem>>, vector<1x128x128xf32>,
    return
  }
  func.func @transform_0(%arg0: i32) -> (i32, i32, i32) {
    %c0_i32 = arith.constant 0 : i32
    %c0_i32_0 = arith.constant 0 : i32
    %c0_i32_1 = arith.constant 0 : i32
    return %arg0, %c0_i32, %c0_i32_0 : i32, i32, i32
  }
  func.func @transform_1(%arg0: i32) -> (i32, i32, i32) {
    %c0_i32 = arith.constant 0 : i32
    %c0_i32_0 = arith.constant 0 : i32
    %c0_i32_1 = arith.constant 0 : i32
    return %arg0, %c0_i32, %c0_i32_0 : i32, i32, i32
  }
  func.func @transform_2(%arg0: i32) -> (i32, i32, i32) {
    %c0_i32 = arith.constant 0 : i32
    %c0_i32_0 = arith.constant 0 : i32
    %c0_i32_1 = arith.constant 0 : i32
    return %arg0, %c0_i32, %c0_i32_0 : i32, i32, i32
  }
  func.func @transform_3(%arg0: i32) -> (i32, i32, i32) {
    %c0_i32 = arith.constant 0 : i32
    %c0_i32_0 = arith.constant 0 : i32
    %c0_i32_1 = arith.constant 0 : i32
    return %arg0, %c0_i32, %c0_i32_0 : i32, i32, i32
  }
  func.func @transform_4(%arg0: i32) -> (i32, i32, i32) {
    %c0_i32 = arith.constant 0 : i32
    %c0_i32_0 = arith.constant 0 : i32
    %c0_i32_1 = arith.constant 0 : i32
    return %arg0, %c0_i32, %c0_i32_0 : i32, i32, i32
  }
  func.func @transform_5(%arg0: i32) -> (i32, i32, i32) {
    %c0_i32 = arith.constant 0 : i32
    %c0_i32_0 = arith.constant 0 : i32
    %c0_i32_1 = arith.constant 0 : i32
    return %arg0, %c0_i32, %c0_i32_0 : i32, i32, i32
  }
}

module attributes {stable_mosaic.version = 11 : i64} {
  func.func @_chain_kernel(%arg0: i32, %arg1: memref<1x128x1152xbf16, #tpu.memory_space<vmem>>, %arg2: memref<1x1152x128xbf16, #tpu.memory_space<vmem>>, %arg3: memref<1x1x128xf32, #tpu.memory_space<vmem>>, %arg4: memref<1x128x128xf32, #tpu.memory_space<vmem>>) attributes {dimension_semantics = [#tpu.dimension_semantics<parallel>], iteration_bounds = array<i64: 3>, scalar_prefetch = 0 : i64, scratch_operands = 0 : i64, tpu.core_type = #tpu.core_type<tc>, window_params = [{transform_indices = @transform_0, window_bounds = array<i64: 1, 128, 1152>}, {transform_indices = @transform_1, window_bounds = array<i64: 1, 1152, 128>}, {transform_indices = @transform_2, window_bounds = array<i64: 1, 1, 128>}, {transform_indices = @transform_3, window_bounds = array<i64: 1, 128, 128>}]} {
    %c0 = arith.constant 0 : index
    %c0_0 = arith.constant 0 : index
    %c0_1 = arith.constant 0 : index
    %0 = vector.load %arg1[%c0, %c0_0, %c0_1] : memref<1x128x1152xbf16, #tpu.memory_space<vmem>>, vector<1x128x1152xbf16>
    %1 = vector.shape_cast %0 : vector<1x128x1152xbf16> to vector<128x1152xbf16>
    %c0_2 = arith.constant 0 : index
    %c0_3 = arith.constant 0 : index
    %c0_4 = arith.constant 0 : index
    %2 = vector.load %arg2[%c0_2, %c0_3, %c0_4] : memref<1x1152x128xbf16, #tpu.memory_space<vmem>>, vector<1x1152x128xbf16>
    %3 = vector.shape_cast %2 : vector<1x1152x128xbf16> to vector<1152x128xbf16>
    %c0_5 = arith.constant 0 : index
    %c0_6 = arith.constant 0 : index
    %c0_7 = arith.constant 0 : index
    %4 = vector.load %arg3[%c0_5, %c0_6, %c0_7] : memref<1x1x128xf32, #tpu.memory_space<vmem>>, vector<1x1x128xf32>
    %5 = vector.shape_cast %4 : vector<1x1x128xf32> to vector<1x128xf32>
    %cst = arith.constant dense<0.000000e+00> : vector<128x128xf32>
    %6 = tpu.matmul %1, %3, %cst {dimension_numbers = #tpu.dot_dimension_numbers<[1], [0], [0], [1], [0, 0, 1, 1], [], []>} : vector<128x1152xbf16>, vector<1152x128xbf16>, vector<128x128xf32> -> vector<128x128xf32>
    %7 = vector.broadcast %5 : vector<1x128xf32> to vector<128x128xf32>
    %8 = arith.addf %6, %7 : vector<128x128xf32>
    %c0_8 = arith.constant 0 : index
    %c0_9 = arith.constant 0 : index
    %c0_10 = arith.constant 0 : index
    %9 = vector.load %arg4[%c0_8, %c0_9, %c0_10] : memref<1x128x128xf32, #tpu.memory_space<vmem>>, vector<1x128x128xf32>
    %10 = vector.shape_cast %9 : vector<1x128x128xf32> to vector<128x128xf32>
    %11 = vector.shape_cast %8 : vector<128x128xf32> to vector<1x128x128xf32>
    tpu.vector_store %arg4[%c0_8, %c0_9, %c0_10], %11 {strides = array<i32>} : memref<1x128x128xf32, #tpu.memory_space<vmem>>, vector<1x128x128xf32>,
    return
  }
  func.func @transform_0(%arg0: i32) -> (i32, i32, i32) {
    %c0_i32 = arith.constant 0 : i32
    %c0_i32_0 = arith.constant 0 : i32
    %c0_i32_1 = arith.constant 0 : i32
    return %arg0, %c0_i32, %c0_i32_0 : i32, i32, i32
  }
  func.func @transform_1(%arg0: i32) -> (i32, i32, i32) {
    %c0_i32 = arith.constant 0 : i32
    %c0_i32_0 = arith.constant 0 : i32
    %c0_i32_1 = arith.constant 0 : i32
    return %arg0, %c0_i32, %c0_i32_0 : i32, i32, i32
  }
  func.func @transform_2(%arg0: i32) -> (i32, i32, i32) {
    %c0_i32 = arith.constant 0 : i32
    %c0_i32_0 = arith.constant 0 : i32
    %c0_i32_1 = arith.constant 0 : i32
    return %arg0, %c0_i32, %c0_i32_0 : i32, i32, i32
  }
  func.func @transform_3(%arg0: i32) -> (i32, i32, i32) {
    %c0_i32 = arith.constant 0 : i32
    %c0_i32_0 = arith.constant 0 : i32
    %c0_i32_1 = arith.constant 0 : i32
    return %arg0, %c0_i32, %c0_i32_0 : i32, i32, i32
  }
}

module attributes {stable_mosaic.version = 11 : i64} {
  func.func @_chain_kernel(%arg0: i32, %arg1: memref<1x32x384xbf16, #tpu.memory_space<vmem>>, %arg2: memref<1x384x128xbf16, #tpu.memory_space<vmem>>, %arg3: memref<1x1x128xf32, #tpu.memory_space<vmem>>, %arg4: memref<1x32x128xf32, #tpu.memory_space<vmem>>) attributes {dimension_semantics = [#tpu.dimension_semantics<parallel>], iteration_bounds = array<i64: 1>, scalar_prefetch = 0 : i64, scratch_operands = 0 : i64, tpu.core_type = #tpu.core_type<tc>, window_params = [{transform_indices = @transform_0, window_bounds = array<i64: 1, 32, 384>}, {transform_indices = @transform_1, window_bounds = array<i64: 1, 384, 128>}, {transform_indices = @transform_2, window_bounds = array<i64: 1, 1, 128>}, {transform_indices = @transform_3, window_bounds = array<i64: 1, 32, 128>}]} {
    %c0 = arith.constant 0 : index
    %c0_0 = arith.constant 0 : index
    %c0_1 = arith.constant 0 : index
    %0 = vector.load %arg1[%c0, %c0_0, %c0_1] : memref<1x32x384xbf16, #tpu.memory_space<vmem>>, vector<1x32x384xbf16>
    %1 = vector.shape_cast %0 : vector<1x32x384xbf16> to vector<32x384xbf16>
    %c0_2 = arith.constant 0 : index
    %c0_3 = arith.constant 0 : index
    %c0_4 = arith.constant 0 : index
    %2 = vector.load %arg2[%c0_2, %c0_3, %c0_4] : memref<1x384x128xbf16, #tpu.memory_space<vmem>>, vector<1x384x128xbf16>
    %3 = vector.shape_cast %2 : vector<1x384x128xbf16> to vector<384x128xbf16>
    %c0_5 = arith.constant 0 : index
    %c0_6 = arith.constant 0 : index
    %c0_7 = arith.constant 0 : index
    %4 = vector.load %arg3[%c0_5, %c0_6, %c0_7] : memref<1x1x128xf32, #tpu.memory_space<vmem>>, vector<1x1x128xf32>
    %5 = vector.shape_cast %4 : vector<1x1x128xf32> to vector<1x128xf32>
    %cst = arith.constant dense<0.000000e+00> : vector<32x128xf32>
    %6 = tpu.matmul %1, %3, %cst {dimension_numbers = #tpu.dot_dimension_numbers<[1], [0], [0], [1], [0, 0, 1, 1], [], []>} : vector<32x384xbf16>, vector<384x128xbf16>, vector<32x128xf32> -> vector<32x128xf32>
    %7 = vector.broadcast %5 : vector<1x128xf32> to vector<32x128xf32>
    %8 = arith.addf %6, %7 : vector<32x128xf32>
    %c0_8 = arith.constant 0 : index
    %c0_9 = arith.constant 0 : index
    %c0_10 = arith.constant 0 : index
    %9 = vector.load %arg4[%c0_8, %c0_9, %c0_10] : memref<1x32x128xf32, #tpu.memory_space<vmem>>, vector<1x32x128xf32>
    %10 = vector.shape_cast %9 : vector<1x32x128xf32> to vector<32x128xf32>
    %11 = vector.shape_cast %8 : vector<32x128xf32> to vector<1x32x128xf32>
    tpu.vector_store %arg4[%c0_8, %c0_9, %c0_10], %11 {strides = array<i32>} : memref<1x32x128xf32, #tpu.memory_space<vmem>>, vector<1x32x128xf32>,
    return
  }
  func.func @transform_0(%arg0: i32) -> (i32, i32, i32) {
    %c0_i32 = arith.constant 0 : i32
    %c0_i32_0 = arith.constant 0 : i32
    %c0_i32_1 = arith.constant 0 : i32
    return %arg0, %c0_i32, %c0_i32_0 : i32, i32, i32
  }
  func.func @transform_1(%arg0: i32) -> (i32, i32, i32) {
    %c0_i32 = arith.constant 0 : i32
    %c0_i32_0 = arith.constant 0 : i32
    %c0_i32_1 = arith.constant 0 : i32
    return %arg0, %c0_i32, %c0_i32_0 : i32, i32, i32
  }
  func.func @transform_2(%arg0: i32) -> (i32, i32, i32) {
    %c0_i32 = arith.constant 0 : i32
    %c0_i32_0 = arith.constant 0 : i32
    %c0_i32_1 = arith.constant 0 : i32
    return %arg0, %c0_i32, %c0_i32_0 : i32, i32, i32
  }
  func.func @transform_3(%arg0: i32) -> (i32, i32, i32) {
    %c0_i32 = arith.constant 0 : i32
    %c0_i32_0 = arith.constant 0 : i32
    %c0_i32_1 = arith.constant 0 : i32
    return %arg0, %c0_i32, %c0_i32_0 : i32, i32, i32
  }
}

module attributes {stable_mosaic.version = 11 : i64} {
  func.func @_chain_kernel(%arg0: i32, %arg1: memref<1x128x640xbf16, #tpu.memory_space<vmem>>, %arg2: memref<1x640x128xbf16, #tpu.memory_space<vmem>>, %arg3: memref<1x1x128xf32, #tpu.memory_space<vmem>>, %arg4: memref<1x128x128xf32, #tpu.memory_space<vmem>>) attributes {dimension_semantics = [#tpu.dimension_semantics<parallel>], iteration_bounds = array<i64: 1>, scalar_prefetch = 0 : i64, scratch_operands = 0 : i64, tpu.core_type = #tpu.core_type<tc>, window_params = [{transform_indices = @transform_0, window_bounds = array<i64: 1, 128, 640>}, {transform_indices = @transform_1, window_bounds = array<i64: 1, 640, 128>}, {transform_indices = @transform_2, window_bounds = array<i64: 1, 1, 128>}, {transform_indices = @transform_3, window_bounds = array<i64: 1, 128, 128>}]} {
    %c0 = arith.constant 0 : index
    %c0_0 = arith.constant 0 : index
    %c0_1 = arith.constant 0 : index
    %0 = vector.load %arg1[%c0, %c0_0, %c0_1] : memref<1x128x640xbf16, #tpu.memory_space<vmem>>, vector<1x128x640xbf16>
    %1 = vector.shape_cast %0 : vector<1x128x640xbf16> to vector<128x640xbf16>
    %c0_2 = arith.constant 0 : index
    %c0_3 = arith.constant 0 : index
    %c0_4 = arith.constant 0 : index
    %2 = vector.load %arg2[%c0_2, %c0_3, %c0_4] : memref<1x640x128xbf16, #tpu.memory_space<vmem>>, vector<1x640x128xbf16>
    %3 = vector.shape_cast %2 : vector<1x640x128xbf16> to vector<640x128xbf16>
    %c0_5 = arith.constant 0 : index
    %c0_6 = arith.constant 0 : index
    %c0_7 = arith.constant 0 : index
    %4 = vector.load %arg3[%c0_5, %c0_6, %c0_7] : memref<1x1x128xf32, #tpu.memory_space<vmem>>, vector<1x1x128xf32>
    %5 = vector.shape_cast %4 : vector<1x1x128xf32> to vector<1x128xf32>
    %cst = arith.constant dense<0.000000e+00> : vector<128x128xf32>
    %6 = tpu.matmul %1, %3, %cst {dimension_numbers = #tpu.dot_dimension_numbers<[1], [0], [0], [1], [0, 0, 1, 1], [], []>} : vector<128x640xbf16>, vector<640x128xbf16>, vector<128x128xf32> -> vector<128x128xf32>
    %7 = vector.broadcast %5 : vector<1x128xf32> to vector<128x128xf32>
    %8 = arith.addf %6, %7 : vector<128x128xf32>
    %c0_8 = arith.constant 0 : index
    %c0_9 = arith.constant 0 : index
    %c0_10 = arith.constant 0 : index
    %9 = vector.load %arg4[%c0_8, %c0_9, %c0_10] : memref<1x128x128xf32, #tpu.memory_space<vmem>>, vector<1x128x128xf32>
    %10 = vector.shape_cast %9 : vector<1x128x128xf32> to vector<128x128xf32>
    %11 = vector.shape_cast %8 : vector<128x128xf32> to vector<1x128x128xf32>
    tpu.vector_store %arg4[%c0_8, %c0_9, %c0_10], %11 {strides = array<i32>} : memref<1x128x128xf32, #tpu.memory_space<vmem>>, vector<1x128x128xf32>,
    return
  }
  func.func @transform_0(%arg0: i32) -> (i32, i32, i32) {
    %c0_i32 = arith.constant 0 : i32
    %c0_i32_0 = arith.constant 0 : i32
    %c0_i32_1 = arith.constant 0 : i32
    return %arg0, %c0_i32, %c0_i32_0 : i32, i32, i32
  }
  func.func @transform_1(%arg0: i32) -> (i32, i32, i32) {
    %c0_i32 = arith.constant 0 : i32
    %c0_i32_0 = arith.constant 0 : i32
    %c0_i32_1 = arith.constant 0 : i32
    return %arg0, %c0_i32, %c0_i32_0 : i32, i32, i32
  }
  func.func @transform_2(%arg0: i32) -> (i32, i32, i32) {
    %c0_i32 = arith.constant 0 : i32
    %c0_i32_0 = arith.constant 0 : i32
    %c0_i32_1 = arith.constant 0 : i32
    return %arg0, %c0_i32, %c0_i32_0 : i32, i32, i32
  }
  func.func @transform_3(%arg0: i32) -> (i32, i32, i32) {
    %c0_i32 = arith.constant 0 : i32
    %c0_i32_0 = arith.constant 0 : i32
    %c0_i32_1 = arith.constant 0 : i32
    return %arg0, %c0_i32, %c0_i32_0 : i32, i32, i32
  }
}

module attributes {stable_mosaic.version = 11 : i64} {
  func.func @_chain_kernel(%arg0: i32, %arg1: memref<1x32x640xbf16, #tpu.memory_space<vmem>>, %arg2: memref<1x640x128xbf16, #tpu.memory_space<vmem>>, %arg3: memref<1x1x128xf32, #tpu.memory_space<vmem>>, %arg4: memref<1x32x128xf32, #tpu.memory_space<vmem>>) attributes {dimension_semantics = [#tpu.dimension_semantics<parallel>], iteration_bounds = array<i64: 1>, scalar_prefetch = 0 : i64, scratch_operands = 0 : i64, tpu.core_type = #tpu.core_type<tc>, window_params = [{transform_indices = @transform_0, window_bounds = array<i64: 1, 32, 640>}, {transform_indices = @transform_1, window_bounds = array<i64: 1, 640, 128>}, {transform_indices = @transform_2, window_bounds = array<i64: 1, 1, 128>}, {transform_indices = @transform_3, window_bounds = array<i64: 1, 32, 128>}]} {
    %c0 = arith.constant 0 : index
    %c0_0 = arith.constant 0 : index
    %c0_1 = arith.constant 0 : index
    %0 = vector.load %arg1[%c0, %c0_0, %c0_1] : memref<1x32x640xbf16, #tpu.memory_space<vmem>>, vector<1x32x640xbf16>
    %1 = vector.shape_cast %0 : vector<1x32x640xbf16> to vector<32x640xbf16>
    %c0_2 = arith.constant 0 : index
    %c0_3 = arith.constant 0 : index
    %c0_4 = arith.constant 0 : index
    %2 = vector.load %arg2[%c0_2, %c0_3, %c0_4] : memref<1x640x128xbf16, #tpu.memory_space<vmem>>, vector<1x640x128xbf16>
    %3 = vector.shape_cast %2 : vector<1x640x128xbf16> to vector<640x128xbf16>
    %c0_5 = arith.constant 0 : index
    %c0_6 = arith.constant 0 : index
    %c0_7 = arith.constant 0 : index
    %4 = vector.load %arg3[%c0_5, %c0_6, %c0_7] : memref<1x1x128xf32, #tpu.memory_space<vmem>>, vector<1x1x128xf32>
    %5 = vector.shape_cast %4 : vector<1x1x128xf32> to vector<1x128xf32>
    %cst = arith.constant dense<0.000000e+00> : vector<32x128xf32>
    %6 = tpu.matmul %1, %3, %cst {dimension_numbers = #tpu.dot_dimension_numbers<[1], [0], [0], [1], [0, 0, 1, 1], [], []>} : vector<32x640xbf16>, vector<640x128xbf16>, vector<32x128xf32> -> vector<32x128xf32>
    %7 = vector.broadcast %5 : vector<1x128xf32> to vector<32x128xf32>
    %8 = arith.addf %6, %7 : vector<32x128xf32>
    %c0_8 = arith.constant 0 : index
    %c0_9 = arith.constant 0 : index
    %c0_10 = arith.constant 0 : index
    %9 = vector.load %arg4[%c0_8, %c0_9, %c0_10] : memref<1x32x128xf32, #tpu.memory_space<vmem>>, vector<1x32x128xf32>
    %10 = vector.shape_cast %9 : vector<1x32x128xf32> to vector<32x128xf32>
    %11 = vector.shape_cast %8 : vector<32x128xf32> to vector<1x32x128xf32>
    tpu.vector_store %arg4[%c0_8, %c0_9, %c0_10], %11 {strides = array<i32>} : memref<1x32x128xf32, #tpu.memory_space<vmem>>, vector<1x32x128xf32>,
    return
  }
  func.func @transform_0(%arg0: i32) -> (i32, i32, i32) {
    %c0_i32 = arith.constant 0 : i32
    %c0_i32_0 = arith.constant 0 : i32
    %c0_i32_1 = arith.constant 0 : i32
    return %arg0, %c0_i32, %c0_i32_0 : i32, i32, i32
  }
  func.func @transform_1(%arg0: i32) -> (i32, i32, i32) {
    %c0_i32 = arith.constant 0 : i32
    %c0_i32_0 = arith.constant 0 : i32
    %c0_i32_1 = arith.constant 0 : i32
    return %arg0, %c0_i32, %c0_i32_0 : i32, i32, i32
  }
  func.func @transform_2(%arg0: i32) -> (i32, i32, i32) {
    %c0_i32 = arith.constant 0 : i32
    %c0_i32_0 = arith.constant 0 : i32
    %c0_i32_1 = arith.constant 0 : i32
    return %arg0, %c0_i32, %c0_i32_0 : i32, i32, i32
  }
  func.func @transform_3(%arg0: i32) -> (i32, i32, i32) {
    %c0_i32 = arith.constant 0 : i32
    %c0_i32_0 = arith.constant 0 : i32
    %c0_i32_1 = arith.constant 0 : i32
    return %arg0, %c0_i32, %c0_i32_0 : i32, i32, i32
  }
}

module attributes {stable_mosaic.version = 11 : i64} {
  func.func @_chain_kernel(%arg0: i32, %arg1: memref<1x128x896xbf16, #tpu.memory_space<vmem>>, %arg2: memref<1x896x128xbf16, #tpu.memory_space<vmem>>, %arg3: memref<1x1x128xf32, #tpu.memory_space<vmem>>, %arg4: memref<1x128x128xf32, #tpu.memory_space<vmem>>) attributes {dimension_semantics = [#tpu.dimension_semantics<parallel>], iteration_bounds = array<i64: 1>, scalar_prefetch = 0 : i64, scratch_operands = 0 : i64, tpu.core_type = #tpu.core_type<tc>, window_params = [{transform_indices = @transform_0, window_bounds = array<i64: 1, 128, 896>}, {transform_indices = @transform_1, window_bounds = array<i64: 1, 896, 128>}, {transform_indices = @transform_2, window_bounds = array<i64: 1, 1, 128>}, {transform_indices = @transform_3, window_bounds = array<i64: 1, 128, 128>}]} {
    %c0 = arith.constant 0 : index
    %c0_0 = arith.constant 0 : index
    %c0_1 = arith.constant 0 : index
    %0 = vector.load %arg1[%c0, %c0_0, %c0_1] : memref<1x128x896xbf16, #tpu.memory_space<vmem>>, vector<1x128x896xbf16>
    %1 = vector.shape_cast %0 : vector<1x128x896xbf16> to vector<128x896xbf16>
    %c0_2 = arith.constant 0 : index
    %c0_3 = arith.constant 0 : index
    %c0_4 = arith.constant 0 : index
    %2 = vector.load %arg2[%c0_2, %c0_3, %c0_4] : memref<1x896x128xbf16, #tpu.memory_space<vmem>>, vector<1x896x128xbf16>
    %3 = vector.shape_cast %2 : vector<1x896x128xbf16> to vector<896x128xbf16>
    %c0_5 = arith.constant 0 : index
    %c0_6 = arith.constant 0 : index
    %c0_7 = arith.constant 0 : index
    %4 = vector.load %arg3[%c0_5, %c0_6, %c0_7] : memref<1x1x128xf32, #tpu.memory_space<vmem>>, vector<1x1x128xf32>
    %5 = vector.shape_cast %4 : vector<1x1x128xf32> to vector<1x128xf32>
    %cst = arith.constant dense<0.000000e+00> : vector<128x128xf32>
    %6 = tpu.matmul %1, %3, %cst {dimension_numbers = #tpu.dot_dimension_numbers<[1], [0], [0], [1], [0, 0, 1, 1], [], []>} : vector<128x896xbf16>, vector<896x128xbf16>, vector<128x128xf32> -> vector<128x128xf32>
    %7 = vector.broadcast %5 : vector<1x128xf32> to vector<128x128xf32>
    %8 = arith.addf %6, %7 : vector<128x128xf32>
    %c0_8 = arith.constant 0 : index
    %c0_9 = arith.constant 0 : index
    %c0_10 = arith.constant 0 : index
    %9 = vector.load %arg4[%c0_8, %c0_9, %c0_10] : memref<1x128x128xf32, #tpu.memory_space<vmem>>, vector<1x128x128xf32>
    %10 = vector.shape_cast %9 : vector<1x128x128xf32> to vector<128x128xf32>
    %11 = vector.shape_cast %8 : vector<128x128xf32> to vector<1x128x128xf32>
    tpu.vector_store %arg4[%c0_8, %c0_9, %c0_10], %11 {strides = array<i32>} : memref<1x128x128xf32, #tpu.memory_space<vmem>>, vector<1x128x128xf32>,
    return
  }
  func.func @transform_0(%arg0: i32) -> (i32, i32, i32) {
    %c0_i32 = arith.constant 0 : i32
    %c0_i32_0 = arith.constant 0 : i32
    %c0_i32_1 = arith.constant 0 : i32
    return %arg0, %c0_i32, %c0_i32_0 : i32, i32, i32
  }
  func.func @transform_1(%arg0: i32) -> (i32, i32, i32) {
    %c0_i32 = arith.constant 0 : i32
    %c0_i32_0 = arith.constant 0 : i32
    %c0_i32_1 = arith.constant 0 : i32
    return %arg0, %c0_i32, %c0_i32_0 : i32, i32, i32
  }
  func.func @transform_2(%arg0: i32) -> (i32, i32, i32) {
    %c0_i32 = arith.constant 0 : i32
    %c0_i32_0 = arith.constant 0 : i32
    %c0_i32_1 = arith.constant 0 : i32
    return %arg0, %c0_i32, %c0_i32_0 : i32, i32, i32
  }
  func.func @transform_3(%arg0: i32) -> (i32, i32, i32) {
    %c0_i32 = arith.constant 0 : i32
    %c0_i32_0 = arith.constant 0 : i32
    %c0_i32_1 = arith.constant 0 : i32
    return %arg0, %c0_i32, %c0_i32_0 : i32, i32, i32
  }
}

module attributes {stable_mosaic.version = 11 : i64} {
  func.func @_chain_kernel(%arg0: i32, %arg1: memref<1x128x896xbf16, #tpu.memory_space<vmem>>, %arg2: memref<1x896x128xbf16, #tpu.memory_space<vmem>>, %arg3: memref<1x1x128xf32, #tpu.memory_space<vmem>>, %arg4: memref<1x128x128xbf16, #tpu.memory_space<vmem>>, %arg5: memref<1x1x128xf32, #tpu.memory_space<vmem>>, %arg6: memref<1x128x128xf32, #tpu.memory_space<vmem>>) attributes {dimension_semantics = [#tpu.dimension_semantics<parallel>], iteration_bounds = array<i64: 1>, scalar_prefetch = 0 : i64, scratch_operands = 0 : i64, tpu.core_type = #tpu.core_type<tc>, window_params = [{transform_indices = @transform_0, window_bounds = array<i64: 1, 128, 896>}, {transform_indices = @transform_1, window_bounds = array<i64: 1, 896, 128>}, {transform_indices = @transform_2, window_bounds = array<i64: 1, 1, 128>}, {transform_indices = @transform_3, window_bounds = array<i64: 1, 128, 128>}, {transform_indices = @transform_4, window_bounds = array<i64: 1, 1, 128>}, {transform_indices = @transform_5, window_bounds = array<i64: 1, 128, 128>}]} {
    %c0 = arith.constant 0 : index
    %c0_0 = arith.constant 0 : index
    %c0_1 = arith.constant 0 : index
    %0 = vector.load %arg1[%c0, %c0_0, %c0_1] : memref<1x128x896xbf16, #tpu.memory_space<vmem>>, vector<1x128x896xbf16>
    %1 = vector.shape_cast %0 : vector<1x128x896xbf16> to vector<128x896xbf16>
    %c0_2 = arith.constant 0 : index
    %c0_3 = arith.constant 0 : index
    %c0_4 = arith.constant 0 : index
    %2 = vector.load %arg2[%c0_2, %c0_3, %c0_4] : memref<1x896x128xbf16, #tpu.memory_space<vmem>>, vector<1x896x128xbf16>
    %3 = vector.shape_cast %2 : vector<1x896x128xbf16> to vector<896x128xbf16>
    %c0_5 = arith.constant 0 : index
    %c0_6 = arith.constant 0 : index
    %c0_7 = arith.constant 0 : index
    %4 = vector.load %arg3[%c0_5, %c0_6, %c0_7] : memref<1x1x128xf32, #tpu.memory_space<vmem>>, vector<1x1x128xf32>
    %5 = vector.shape_cast %4 : vector<1x1x128xf32> to vector<1x128xf32>
    %cst = arith.constant dense<0.000000e+00> : vector<128x128xf32>
    %6 = tpu.matmul %1, %3, %cst {dimension_numbers = #tpu.dot_dimension_numbers<[1], [0], [0], [1], [0, 0, 1, 1], [], []>} : vector<128x896xbf16>, vector<896x128xbf16>, vector<128x128xf32> -> vector<128x128xf32>
    %7 = vector.broadcast %5 : vector<1x128xf32> to vector<128x128xf32>
    %8 = arith.addf %6, %7 : vector<128x128xf32>
    %9 = arith.truncf %8 : vector<128x128xf32> to vector<128x128xbf16>
    %c0_8 = arith.constant 0 : index
    %c0_9 = arith.constant 0 : index
    %c0_10 = arith.constant 0 : index
    %10 = vector.load %arg4[%c0_8, %c0_9, %c0_10] : memref<1x128x128xbf16, #tpu.memory_space<vmem>>, vector<1x128x128xbf16>
    %11 = vector.shape_cast %10 : vector<1x128x128xbf16> to vector<128x128xbf16>
    %c0_11 = arith.constant 0 : index
    %c0_12 = arith.constant 0 : index
    %c0_13 = arith.constant 0 : index
    %12 = vector.load %arg5[%c0_11, %c0_12, %c0_13] : memref<1x1x128xf32, #tpu.memory_space<vmem>>, vector<1x1x128xf32>
    %13 = vector.shape_cast %12 : vector<1x1x128xf32> to vector<1x128xf32>
    %cst_14 = arith.constant dense<0.000000e+00> : vector<128x128xf32>
    %14 = tpu.matmul %9, %11, %cst_14 {dimension_numbers = #tpu.dot_dimension_numbers<[1], [0], [0], [1], [0, 0, 1, 1], [], []>} : vector<128x128xbf16>, vector<128x128xbf16>, vector<128x128xf32> -> vector<128x128xf32>
    %15 = vector.broadcast %13 : vector<1x128xf32> to vector<128x128xf32>
    %16 = arith.addf %14, %15 : vector<128x128xf32>
    %c0_15 = arith.constant 0 : index
    %c0_16 = arith.constant 0 : index
    %c0_17 = arith.constant 0 : index
    %17 = vector.load %arg6[%c0_15, %c0_16, %c0_17] : memref<1x128x128xf32, #tpu.memory_space<vmem>>, vector<1x128x128xf32>
    %18 = vector.shape_cast %17 : vector<1x128x128xf32> to vector<128x128xf32>
    %19 = vector.shape_cast %16 : vector<128x128xf32> to vector<1x128x128xf32>
    tpu.vector_store %arg6[%c0_15, %c0_16, %c0_17], %19 {strides = array<i32>} : memref<1x128x128xf32, #tpu.memory_space<vmem>>, vector<1x128x128xf32>,
    return
  }
  func.func @transform_0(%arg0: i32) -> (i32, i32, i32) {
    %c0_i32 = arith.constant 0 : i32
    %c0_i32_0 = arith.constant 0 : i32
    %c0_i32_1 = arith.constant 0 : i32
    return %arg0, %c0_i32, %c0_i32_0 : i32, i32, i32
  }
  func.func @transform_1(%arg0: i32) -> (i32, i32, i32) {
    %c0_i32 = arith.constant 0 : i32
    %c0_i32_0 = arith.constant 0 : i32
    %c0_i32_1 = arith.constant 0 : i32
    return %arg0, %c0_i32, %c0_i32_0 : i32, i32, i32
  }
  func.func @transform_2(%arg0: i32) -> (i32, i32, i32) {
    %c0_i32 = arith.constant 0 : i32
    %c0_i32_0 = arith.constant 0 : i32
    %c0_i32_1 = arith.constant 0 : i32
    return %arg0, %c0_i32, %c0_i32_0 : i32, i32, i32
  }
  func.func @transform_3(%arg0: i32) -> (i32, i32, i32) {
    %c0_i32 = arith.constant 0 : i32
    %c0_i32_0 = arith.constant 0 : i32
    %c0_i32_1 = arith.constant 0 : i32
    return %arg0, %c0_i32, %c0_i32_0 : i32, i32, i32
  }
  func.func @transform_4(%arg0: i32) -> (i32, i32, i32) {
    %c0_i32 = arith.constant 0 : i32
    %c0_i32_0 = arith.constant 0 : i32
    %c0_i32_1 = arith.constant 0 : i32
    return %arg0, %c0_i32, %c0_i32_0 : i32, i32, i32
  }
  func.func @transform_5(%arg0: i32) -> (i32, i32, i32) {
    %c0_i32 = arith.constant 0 : i32
    %c0_i32_0 = arith.constant 0 : i32
    %c0_i32_1 = arith.constant 0 : i32
    return %arg0, %c0_i32, %c0_i32_0 : i32, i32, i32
  }
}

module attributes {stable_mosaic.version = 11 : i64} {
  func.func @_chain_kernel(%arg0: i32, %arg1: memref<1x128x128xbf16, #tpu.memory_space<vmem>>, %arg2: memref<1x128x128xbf16, #tpu.memory_space<vmem>>, %arg3: memref<1x1x128xf32, #tpu.memory_space<vmem>>, %arg4: memref<1x128x128xf32, #tpu.memory_space<vmem>>) attributes {dimension_semantics = [#tpu.dimension_semantics<parallel>], iteration_bounds = array<i64: 1>, scalar_prefetch = 0 : i64, scratch_operands = 0 : i64, tpu.core_type = #tpu.core_type<tc>, window_params = [{transform_indices = @transform_0, window_bounds = array<i64: 1, 128, 128>}, {transform_indices = @transform_1, window_bounds = array<i64: 1, 128, 128>}, {transform_indices = @transform_2, window_bounds = array<i64: 1, 1, 128>}, {transform_indices = @transform_3, window_bounds = array<i64: 1, 128, 128>}]} {
    %c0 = arith.constant 0 : index
    %c0_0 = arith.constant 0 : index
    %c0_1 = arith.constant 0 : index
    %0 = vector.load %arg1[%c0, %c0_0, %c0_1] : memref<1x128x128xbf16, #tpu.memory_space<vmem>>, vector<1x128x128xbf16>
    %1 = vector.shape_cast %0 : vector<1x128x128xbf16> to vector<128x128xbf16>
    %c0_2 = arith.constant 0 : index
    %c0_3 = arith.constant 0 : index
    %c0_4 = arith.constant 0 : index
    %2 = vector.load %arg2[%c0_2, %c0_3, %c0_4] : memref<1x128x128xbf16, #tpu.memory_space<vmem>>, vector<1x128x128xbf16>
    %3 = vector.shape_cast %2 : vector<1x128x128xbf16> to vector<128x128xbf16>
    %c0_5 = arith.constant 0 : index
    %c0_6 = arith.constant 0 : index
    %c0_7 = arith.constant 0 : index
    %4 = vector.load %arg3[%c0_5, %c0_6, %c0_7] : memref<1x1x128xf32, #tpu.memory_space<vmem>>, vector<1x1x128xf32>
    %5 = vector.shape_cast %4 : vector<1x1x128xf32> to vector<1x128xf32>
    %cst = arith.constant dense<0.000000e+00> : vector<128x128xf32>
    %6 = tpu.matmul %1, %3, %cst {dimension_numbers = #tpu.dot_dimension_numbers<[1], [0], [0], [1], [0, 0, 1, 1], [], []>} : vector<128x128xbf16>, vector<128x128xbf16>, vector<128x128xf32> -> vector<128x128xf32>
    %7 = vector.broadcast %5 : vector<1x128xf32> to vector<128x128xf32>
    %8 = arith.addf %6, %7 : vector<128x128xf32>
    %c0_8 = arith.constant 0 : index
    %c0_9 = arith.constant 0 : index
    %c0_10 = arith.constant 0 : index
    %9 = vector.load %arg4[%c0_8, %c0_9, %c0_10] : memref<1x128x128xf32, #tpu.memory_space<vmem>>, vector<1x128x128xf32>
    %10 = vector.shape_cast %9 : vector<1x128x128xf32> to vector<128x128xf32>
    %11 = vector.shape_cast %8 : vector<128x128xf32> to vector<1x128x128xf32>
    tpu.vector_store %arg4[%c0_8, %c0_9, %c0_10], %11 {strides = array<i32>} : memref<1x128x128xf32, #tpu.memory_space<vmem>>, vector<1x128x128xf32>,
    return
  }
  func.func @transform_0(%arg0: i32) -> (i32, i32, i32) {
    %c0_i32 = arith.constant 0 : i32
    %c0_i32_0 = arith.constant 0 : i32
    %c0_i32_1 = arith.constant 0 : i32
    return %arg0, %c0_i32, %c0_i32_0 : i32, i32, i32
  }
  func.func @transform_1(%arg0: i32) -> (i32, i32, i32) {
    %c0_i32 = arith.constant 0 : i32
    %c0_i32_0 = arith.constant 0 : i32
    %c0_i32_1 = arith.constant 0 : i32
    return %arg0, %c0_i32, %c0_i32_0 : i32, i32, i32
  }
  func.func @transform_2(%arg0: i32) -> (i32, i32, i32) {
    %c0_i32 = arith.constant 0 : i32
    %c0_i32_0 = arith.constant 0 : i32
    %c0_i32_1 = arith.constant 0 : i32
    return %arg0, %c0_i32, %c0_i32_0 : i32, i32, i32
  }
  func.func @transform_3(%arg0: i32) -> (i32, i32, i32) {
    %c0_i32 = arith.constant 0 : i32
    %c0_i32_0 = arith.constant 0 : i32
    %c0_i32_1 = arith.constant 0 : i32
    return %arg0, %c0_i32, %c0_i32_0 : i32, i32, i32
  }
}

module attributes {stable_mosaic.version = 11 : i64} {
  func.func @_chain_kernel(%arg0: i32, %arg1: memref<1x128x384xbf16, #tpu.memory_space<vmem>>, %arg2: memref<1x384x128xbf16, #tpu.memory_space<vmem>>, %arg3: memref<1x1x128xf32, #tpu.memory_space<vmem>>, %arg4: memref<1x128x128xf32, #tpu.memory_space<vmem>>) attributes {dimension_semantics = [#tpu.dimension_semantics<parallel>], iteration_bounds = array<i64: 1>, scalar_prefetch = 0 : i64, scratch_operands = 0 : i64, tpu.core_type = #tpu.core_type<tc>, window_params = [{transform_indices = @transform_0, window_bounds = array<i64: 1, 128, 384>}, {transform_indices = @transform_1, window_bounds = array<i64: 1, 384, 128>}, {transform_indices = @transform_2, window_bounds = array<i64: 1, 1, 128>}, {transform_indices = @transform_3, window_bounds = array<i64: 1, 128, 128>}]} {
    %c0 = arith.constant 0 : index
    %c0_0 = arith.constant 0 : index
    %c0_1 = arith.constant 0 : index
    %0 = vector.load %arg1[%c0, %c0_0, %c0_1] : memref<1x128x384xbf16, #tpu.memory_space<vmem>>, vector<1x128x384xbf16>
    %1 = vector.shape_cast %0 : vector<1x128x384xbf16> to vector<128x384xbf16>
    %c0_2 = arith.constant 0 : index
    %c0_3 = arith.constant 0 : index
    %c0_4 = arith.constant 0 : index
    %2 = vector.load %arg2[%c0_2, %c0_3, %c0_4] : memref<1x384x128xbf16, #tpu.memory_space<vmem>>, vector<1x384x128xbf16>
    %3 = vector.shape_cast %2 : vector<1x384x128xbf16> to vector<384x128xbf16>
    %c0_5 = arith.constant 0 : index
    %c0_6 = arith.constant 0 : index
    %c0_7 = arith.constant 0 : index
    %4 = vector.load %arg3[%c0_5, %c0_6, %c0_7] : memref<1x1x128xf32, #tpu.memory_space<vmem>>, vector<1x1x128xf32>
    %5 = vector.shape_cast %4 : vector<1x1x128xf32> to vector<1x128xf32>
    %cst = arith.constant dense<0.000000e+00> : vector<128x128xf32>
    %6 = tpu.matmul %1, %3, %cst {dimension_numbers = #tpu.dot_dimension_numbers<[1], [0], [0], [1], [0, 0, 1, 1], [], []>} : vector<128x384xbf16>, vector<384x128xbf16>, vector<128x128xf32> -> vector<128x128xf32>
    %7 = vector.broadcast %5 : vector<1x128xf32> to vector<128x128xf32>
    %8 = arith.addf %6, %7 : vector<128x128xf32>
    %cst_8 = arith.constant 0.000000e+00 : f32
    %9 = vector.broadcast %cst_8 : f32 to vector<128x128xf32>
    %10 = arith.maximumf %8, %9 : vector<128x128xf32>
    %c0_9 = arith.constant 0 : index
    %c0_10 = arith.constant 0 : index
    %c0_11 = arith.constant 0 : index
    %11 = vector.load %arg4[%c0_9, %c0_10, %c0_11] : memref<1x128x128xf32, #tpu.memory_space<vmem>>, vector<1x128x128xf32>
    %12 = vector.shape_cast %11 : vector<1x128x128xf32> to vector<128x128xf32>
    %13 = vector.shape_cast %10 : vector<128x128xf32> to vector<1x128x128xf32>
    tpu.vector_store %arg4[%c0_9, %c0_10, %c0_11], %13 {strides = array<i32>} : memref<1x128x128xf32, #tpu.memory_space<vmem>>, vector<1x128x128xf32>,
    return
  }
  func.func @transform_0(%arg0: i32) -> (i32, i32, i32) {
    %c0_i32 = arith.constant 0 : i32
    %c0_i32_0 = arith.constant 0 : i32
    %c0_i32_1 = arith.constant 0 : i32
    return %arg0, %c0_i32, %c0_i32_0 : i32, i32, i32
  }
  func.func @transform_1(%arg0: i32) -> (i32, i32, i32) {
    %c0_i32 = arith.constant 0 : i32
    %c0_i32_0 = arith.constant 0 : i32
    %c0_i32_1 = arith.constant 0 : i32
    return %arg0, %c0_i32, %c0_i32_0 : i32, i32, i32
  }
  func.func @transform_2(%arg0: i32) -> (i32, i32, i32) {
    %c0_i32 = arith.constant 0 : i32
    %c0_i32_0 = arith.constant 0 : i32
    %c0_i32_1 = arith.constant 0 : i32
    return %arg0, %c0_i32, %c0_i32_0 : i32, i32, i32
  }
  func.func @transform_3(%arg0: i32) -> (i32, i32, i32) {
    %c0_i32 = arith.constant 0 : i32
    %c0_i32_0 = arith.constant 0 : i32
    %c0_i32_1 = arith.constant 0 : i32
    return %arg0, %c0_i32, %c0_i32_0 : i32, i32, i32
  }
}

module attributes {stable_mosaic.version = 11 : i64} {
  func.func @_chain_kernel(%arg0: i32, %arg1: memref<1x32x128xbf16, #tpu.memory_space<vmem>>, %arg2: memref<1x128x128xbf16, #tpu.memory_space<vmem>>, %arg3: memref<1x1x128xf32, #tpu.memory_space<vmem>>, %arg4: memref<1x32x128xf32, #tpu.memory_space<vmem>>) attributes {dimension_semantics = [#tpu.dimension_semantics<parallel>], iteration_bounds = array<i64: 1>, scalar_prefetch = 0 : i64, scratch_operands = 0 : i64, tpu.core_type = #tpu.core_type<tc>, window_params = [{transform_indices = @transform_0, window_bounds = array<i64: 1, 32, 128>}, {transform_indices = @transform_1, window_bounds = array<i64: 1, 128, 128>}, {transform_indices = @transform_2, window_bounds = array<i64: 1, 1, 128>}, {transform_indices = @transform_3, window_bounds = array<i64: 1, 32, 128>}]} {
    %c0 = arith.constant 0 : index
    %c0_0 = arith.constant 0 : index
    %c0_1 = arith.constant 0 : index
    %0 = vector.load %arg1[%c0, %c0_0, %c0_1] : memref<1x32x128xbf16, #tpu.memory_space<vmem>>, vector<1x32x128xbf16>
    %1 = vector.shape_cast %0 : vector<1x32x128xbf16> to vector<32x128xbf16>
    %c0_2 = arith.constant 0 : index
    %c0_3 = arith.constant 0 : index
    %c0_4 = arith.constant 0 : index
    %2 = vector.load %arg2[%c0_2, %c0_3, %c0_4] : memref<1x128x128xbf16, #tpu.memory_space<vmem>>, vector<1x128x128xbf16>
    %3 = vector.shape_cast %2 : vector<1x128x128xbf16> to vector<128x128xbf16>
    %c0_5 = arith.constant 0 : index
    %c0_6 = arith.constant 0 : index
    %c0_7 = arith.constant 0 : index
    %4 = vector.load %arg3[%c0_5, %c0_6, %c0_7] : memref<1x1x128xf32, #tpu.memory_space<vmem>>, vector<1x1x128xf32>
    %5 = vector.shape_cast %4 : vector<1x1x128xf32> to vector<1x128xf32>
    %cst = arith.constant dense<0.000000e+00> : vector<32x128xf32>
    %6 = tpu.matmul %1, %3, %cst {dimension_numbers = #tpu.dot_dimension_numbers<[1], [0], [0], [1], [0, 0, 1, 1], [], []>} : vector<32x128xbf16>, vector<128x128xbf16>, vector<32x128xf32> -> vector<32x128xf32>
    %7 = vector.broadcast %5 : vector<1x128xf32> to vector<32x128xf32>
    %8 = arith.addf %6, %7 : vector<32x128xf32>
    %cst_8 = arith.constant 0.000000e+00 : f32
    %9 = vector.broadcast %cst_8 : f32 to vector<32x128xf32>
    %10 = arith.maximumf %8, %9 : vector<32x128xf32>
    %c0_9 = arith.constant 0 : index
    %c0_10 = arith.constant 0 : index
    %c0_11 = arith.constant 0 : index
    %11 = vector.load %arg4[%c0_9, %c0_10, %c0_11] : memref<1x32x128xf32, #tpu.memory_space<vmem>>, vector<1x32x128xf32>
    %12 = vector.shape_cast %11 : vector<1x32x128xf32> to vector<32x128xf32>
    %13 = vector.shape_cast %10 : vector<32x128xf32> to vector<1x32x128xf32>
    tpu.vector_store %arg4[%c0_9, %c0_10, %c0_11], %13 {strides = array<i32>} : memref<1x32x128xf32, #tpu.memory_space<vmem>>, vector<1x32x128xf32>,
    return
  }
  func.func @transform_0(%arg0: i32) -> (i32, i32, i32) {
    %c0_i32 = arith.constant 0 : i32
    %c0_i32_0 = arith.constant 0 : i32
    %c0_i32_1 = arith.constant 0 : i32
    return %arg0, %c0_i32, %c0_i32_0 : i32, i32, i32
  }
  func.func @transform_1(%arg0: i32) -> (i32, i32, i32) {
    %c0_i32 = arith.constant 0 : i32
    %c0_i32_0 = arith.constant 0 : i32
    %c0_i32_1 = arith.constant 0 : i32
    return %arg0, %c0_i32, %c0_i32_0 : i32, i32, i32
  }
  func.func @transform_2(%arg0: i32) -> (i32, i32, i32) {
    %c0_i32 = arith.constant 0 : i32
    %c0_i32_0 = arith.constant 0 : i32
    %c0_i32_1 = arith.constant 0 : i32
    return %arg0, %c0_i32, %c0_i32_0 : i32, i32, i32
  }
  func.func @transform_3(%arg0: i32) -> (i32, i32, i32) {
    %c0_i32 = arith.constant 0 : i32
    %c0_i32_0 = arith.constant 0 : i32
    %c0_i32_1 = arith.constant 0 : i32
    return %arg0, %c0_i32, %c0_i32_0 : i32, i32, i32
  }
}

module attributes {stable_mosaic.version = 11 : i64} {
  func.func @_chain_kernel(%arg0: i32, %arg1: memref<1x32x384xbf16, #tpu.memory_space<vmem>>, %arg2: memref<1x384x128xbf16, #tpu.memory_space<vmem>>, %arg3: memref<1x1x128xf32, #tpu.memory_space<vmem>>, %arg4: memref<1x32x128xf32, #tpu.memory_space<vmem>>) attributes {dimension_semantics = [#tpu.dimension_semantics<parallel>], iteration_bounds = array<i64: 1>, scalar_prefetch = 0 : i64, scratch_operands = 0 : i64, tpu.core_type = #tpu.core_type<tc>, window_params = [{transform_indices = @transform_0, window_bounds = array<i64: 1, 32, 384>}, {transform_indices = @transform_1, window_bounds = array<i64: 1, 384, 128>}, {transform_indices = @transform_2, window_bounds = array<i64: 1, 1, 128>}, {transform_indices = @transform_3, window_bounds = array<i64: 1, 32, 128>}]} {
    %c0 = arith.constant 0 : index
    %c0_0 = arith.constant 0 : index
    %c0_1 = arith.constant 0 : index
    %0 = vector.load %arg1[%c0, %c0_0, %c0_1] : memref<1x32x384xbf16, #tpu.memory_space<vmem>>, vector<1x32x384xbf16>
    %1 = vector.shape_cast %0 : vector<1x32x384xbf16> to vector<32x384xbf16>
    %c0_2 = arith.constant 0 : index
    %c0_3 = arith.constant 0 : index
    %c0_4 = arith.constant 0 : index
    %2 = vector.load %arg2[%c0_2, %c0_3, %c0_4] : memref<1x384x128xbf16, #tpu.memory_space<vmem>>, vector<1x384x128xbf16>
    %3 = vector.shape_cast %2 : vector<1x384x128xbf16> to vector<384x128xbf16>
    %c0_5 = arith.constant 0 : index
    %c0_6 = arith.constant 0 : index
    %c0_7 = arith.constant 0 : index
    %4 = vector.load %arg3[%c0_5, %c0_6, %c0_7] : memref<1x1x128xf32, #tpu.memory_space<vmem>>, vector<1x1x128xf32>
    %5 = vector.shape_cast %4 : vector<1x1x128xf32> to vector<1x128xf32>
    %cst = arith.constant dense<0.000000e+00> : vector<32x128xf32>
    %6 = tpu.matmul %1, %3, %cst {dimension_numbers = #tpu.dot_dimension_numbers<[1], [0], [0], [1], [0, 0, 1, 1], [], []>} : vector<32x384xbf16>, vector<384x128xbf16>, vector<32x128xf32> -> vector<32x128xf32>
    %7 = vector.broadcast %5 : vector<1x128xf32> to vector<32x128xf32>
    %8 = arith.addf %6, %7 : vector<32x128xf32>
    %cst_8 = arith.constant 0.000000e+00 : f32
    %9 = vector.broadcast %cst_8 : f32 to vector<32x128xf32>
    %10 = arith.maximumf %8, %9 : vector<32x128xf32>
    %c0_9 = arith.constant 0 : index
    %c0_10 = arith.constant 0 : index
    %c0_11 = arith.constant 0 : index
    %11 = vector.load %arg4[%c0_9, %c0_10, %c0_11] : memref<1x32x128xf32, #tpu.memory_space<vmem>>, vector<1x32x128xf32>
    %12 = vector.shape_cast %11 : vector<1x32x128xf32> to vector<32x128xf32>
    %13 = vector.shape_cast %10 : vector<32x128xf32> to vector<1x32x128xf32>
    tpu.vector_store %arg4[%c0_9, %c0_10, %c0_11], %13 {strides = array<i32>} : memref<1x32x128xf32, #tpu.memory_space<vmem>>, vector<1x32x128xf32>,
    return
  }
  func.func @transform_0(%arg0: i32) -> (i32, i32, i32) {
    %c0_i32 = arith.constant 0 : i32
    %c0_i32_0 = arith.constant 0 : i32
    %c0_i32_1 = arith.constant 0 : i32
    return %arg0, %c0_i32, %c0_i32_0 : i32, i32, i32
  }
  func.func @transform_1(%arg0: i32) -> (i32, i32, i32) {
    %c0_i32 = arith.constant 0 : i32
    %c0_i32_0 = arith.constant 0 : i32
    %c0_i32_1 = arith.constant 0 : i32
    return %arg0, %c0_i32, %c0_i32_0 : i32, i32, i32
  }
  func.func @transform_2(%arg0: i32) -> (i32, i32, i32) {
    %c0_i32 = arith.constant 0 : i32
    %c0_i32_0 = arith.constant 0 : i32
    %c0_i32_1 = arith.constant 0 : i32
    return %arg0, %c0_i32, %c0_i32_0 : i32, i32, i32
  }
  func.func @transform_3(%arg0: i32) -> (i32, i32, i32) {
    %c0_i32 = arith.constant 0 : i32
    %c0_i32_0 = arith.constant 0 : i32
    %c0_i32_1 = arith.constant 0 : i32
    return %arg0, %c0_i32, %c0_i32_0 : i32, i32, i32
  }
}

module attributes {stable_mosaic.version = 11 : i64} {
  func.func @_chain_kernel(%arg0: i32, %arg1: memref<1x8x128xbf16, #tpu.memory_space<vmem>>, %arg2: memref<1x128x128xbf16, #tpu.memory_space<vmem>>, %arg3: memref<1x1x128xf32, #tpu.memory_space<vmem>>, %arg4: memref<1x8x128xf32, #tpu.memory_space<vmem>>) attributes {dimension_semantics = [#tpu.dimension_semantics<parallel>], iteration_bounds = array<i64: 1>, scalar_prefetch = 0 : i64, scratch_operands = 0 : i64, tpu.core_type = #tpu.core_type<tc>, window_params = [{transform_indices = @transform_0, window_bounds = array<i64: 1, 8, 128>}, {transform_indices = @transform_1, window_bounds = array<i64: 1, 128, 128>}, {transform_indices = @transform_2, window_bounds = array<i64: 1, 1, 128>}, {transform_indices = @transform_3, window_bounds = array<i64: 1, 8, 128>}]} {
    %c0 = arith.constant 0 : index
    %c0_0 = arith.constant 0 : index
    %c0_1 = arith.constant 0 : index
    %0 = vector.load %arg1[%c0, %c0_0, %c0_1] : memref<1x8x128xbf16, #tpu.memory_space<vmem>>, vector<1x8x128xbf16>
    %1 = vector.shape_cast %0 : vector<1x8x128xbf16> to vector<8x128xbf16>
    %c0_2 = arith.constant 0 : index
    %c0_3 = arith.constant 0 : index
    %c0_4 = arith.constant 0 : index
    %2 = vector.load %arg2[%c0_2, %c0_3, %c0_4] : memref<1x128x128xbf16, #tpu.memory_space<vmem>>, vector<1x128x128xbf16>
    %3 = vector.shape_cast %2 : vector<1x128x128xbf16> to vector<128x128xbf16>
    %c0_5 = arith.constant 0 : index
    %c0_6 = arith.constant 0 : index
    %c0_7 = arith.constant 0 : index
    %4 = vector.load %arg3[%c0_5, %c0_6, %c0_7] : memref<1x1x128xf32, #tpu.memory_space<vmem>>, vector<1x1x128xf32>
    %5 = vector.shape_cast %4 : vector<1x1x128xf32> to vector<1x128xf32>
    %cst = arith.constant dense<0.000000e+00> : vector<8x128xf32>
    %6 = tpu.matmul %1, %3, %cst {dimension_numbers = #tpu.dot_dimension_numbers<[1], [0], [0], [1], [0, 0, 1, 1], [], []>} : vector<8x128xbf16>, vector<128x128xbf16>, vector<8x128xf32> -> vector<8x128xf32>
    %7 = vector.broadcast %5 : vector<1x128xf32> to vector<8x128xf32>
    %8 = arith.addf %6, %7 : vector<8x128xf32>
    %cst_8 = arith.constant 0.000000e+00 : f32
    %9 = vector.broadcast %cst_8 : f32 to vector<8x128xf32>
    %10 = arith.maximumf %8, %9 : vector<8x128xf32>
    %c0_9 = arith.constant 0 : index
    %c0_10 = arith.constant 0 : index
    %c0_11 = arith.constant 0 : index
    %11 = vector.load %arg4[%c0_9, %c0_10, %c0_11] : memref<1x8x128xf32, #tpu.memory_space<vmem>>, vector<1x8x128xf32>
    %12 = vector.shape_cast %11 : vector<1x8x128xf32> to vector<8x128xf32>
    %13 = vector.shape_cast %10 : vector<8x128xf32> to vector<1x8x128xf32>
    tpu.vector_store %arg4[%c0_9, %c0_10, %c0_11], %13 {strides = array<i32>} : memref<1x8x128xf32, #tpu.memory_space<vmem>>, vector<1x8x128xf32>,
    return
  }
  func.func @transform_0(%arg0: i32) -> (i32, i32, i32) {
    %c0_i32 = arith.constant 0 : i32
    %c0_i32_0 = arith.constant 0 : i32
    %c0_i32_1 = arith.constant 0 : i32
    return %arg0, %c0_i32, %c0_i32_0 : i32, i32, i32
  }
  func.func @transform_1(%arg0: i32) -> (i32, i32, i32) {
    %c0_i32 = arith.constant 0 : i32
    %c0_i32_0 = arith.constant 0 : i32
    %c0_i32_1 = arith.constant 0 : i32
    return %arg0, %c0_i32, %c0_i32_0 : i32, i32, i32
  }
  func.func @transform_2(%arg0: i32) -> (i32, i32, i32) {
    %c0_i32 = arith.constant 0 : i32
    %c0_i32_0 = arith.constant 0 : i32
    %c0_i32_1 = arith.constant 0 : i32
    return %arg0, %c0_i32, %c0_i32_0 : i32, i32, i32
  }
  func.func @transform_3(%arg0: i32) -> (i32, i32, i32) {
    %c0_i32 = arith.constant 0 : i32
    %c0_i32_0 = arith.constant 0 : i32
    %c0_i32_1 = arith.constant 0 : i32
    return %arg0, %c0_i32, %c0_i32_0 : i32, i32, i32
  }
}

</mosaic_0001>

<bundles_post_ra>
// kernel: mul.483
= control target key start
LH: loop header
LB: loop body
LE: loop exit
PB: predicated region body
PF: predicated region fallthrough
CT: control target
= control target key end

     0   :  { %s130_s8 = smov 120   ;;  %s131_s9 = smov 88   ;;  %vm7_vm0 = vcmask 64512   ;;  %s221_s0 = inlined_call_operand.vmem [shape: f32[128], index: 0, kind: input, shape index: {}]   ;;  %s222_s1 = inlined_call_operand.vmem [shape: f32[2,8,8], index: 1, kind: output, shape index: {}]  }
   0x1   :  { %v4_v0 = vld [vmem:[%s221_s0] sm:$0x1]  ;;  %s129_s0 = smov 104   ;;  %s132_s10 = smov 96  }
   0x2   :  { %5 = vst [vmem:[#allocation0] sm:$0x1] %v4_v0  ;;  %s133_s11 = smov 112   ;;  %s134_s12 = smov 80  }
   0x3   :  { %s135_s13 = smov 64   ;;  %s136_s14 = smov 72  }
   0x4   :  { %s137_s15 = smov 56   ;;  %s138_s16 = smov 40  }
   0x5   :  { %s139_s17 = smov 48   ;;  %s140_s18 = smov 32  }
   0x6   :  { %s141_s19 = smov 16   ;;  %s142_s20 = smov 24  }
   0x7   :  { %s143_s21 = smov 8  }
   0x9   :  { %v21_v1 = vld [vmem:[#allocation0] sm:$0x1]  }
   0xa   :  { %v9_v2 = vld [vmem:[#allocation0] sm:$0x1]   ;;  %22 = vrot.lane.b32.xlu1 %v21_v1, %s129_s0 }
   0xb   :  { %10 = vrot.lane.b32.xlu0 %v9_v2, %s130_s8  ;;  %v33_v3 = vld [vmem:[#allocation0] sm:$0x1]  }
   0xc   :  { %34 = vrot.lane.b32.xlu2 %v33_v3, %s131_s9  ;;  %v27_v4 = vld [vmem:[#allocation0] sm:$0x1]  }
   0xd   :  { %v15_v5 = vld [vmem:[#allocation0] sm:$0x1]  }
   0xe   :  { %v39_v6 = vld [vmem:[#allocation0] sm:$0x1]  }
   0xf   :  { %v51_v7 = vld [vmem:[#allocation0] sm:$0x1]  }
  0x10   :  { %v45_v8 = vld [vmem:[#allocation0] sm:$0x1]  }
  0x11   :  { %v57_v9 = vld [vmem:[#allocation0] sm:$0x1]  }
  0x12   :  { %28 = vrot.lane.b32.xlu1 %v27_v4, %s132_s10  ;;  %v69_v10 = vld [vmem:[#allocation0] sm:$0x1]  }
  0x13   :  { %16 = vrot.lane.b32.xlu0 %v15_v5, %s133_s11  ;;  %v63_v11 = vld [vmem:[#allocation0] sm:$0x1]  }
  0x14   :  { %40 = vrot.lane.b32.xlu2 %v39_v6, %s134_s12  ;;  %v75_v12 = vld [vmem:[#allocation0] sm:$0x1]  }
  0x15   :  { %v87_v13 = vld [vmem:[#allocation0] sm:$0x1]  }
  0x16   :  { %v81_v14 = vld [vmem:[#allocation0] sm:$0x1]  }
  0x17   :  { %v93_v15 = vld [vmem:[#allocation0] sm:$0x1]  }
  0x18   :  { %v6_v21 = vld [vmem:[#allocation0] sm:$0x1]  }
  0x19   :  { %8 = vst.msk [vmem:[%s222_s1] sm:$0x1] %vm7_vm0, %v6_v21  }
  0x1a   :  { %52 = vrot.lane.b32.xlu1 %v51_v7, %s135_s13 }
  0x1b   :  { %46 = vrot.lane.b32.xlu0 %v45_v8, %s136_s14 }
  0x1c   :  { %58 = vrot.lane.b32.xlu2 %v57_v9, %s137_s15 }
  0x22   :  { %70 = vrot.lane.b32.xlu1 %v69_v10, %s138_s16 }
  0x23   :  { %64 = vrot.lane.b32.xlu0 %v63_v11, %s139_s17 }
  0x24   :  { %76 = vrot.lane.b32.xlu2 %v75_v12, %s140_s18 }
  0x2a   :  { %88 = vrot.lane.b32.xlu1 %v87_v13, %s141_s19 }
  0x2b   :  { %82 = vrot.lane.b32.xlu0 %v81_v14, %s142_s20 }
  0x2c   :  { %94 = vrot.lane.b32.xlu2 %v93_v15, %s143_s21 }
  0x66   :  { %v35_v16 = vpop.permute.xlu2 %34  }
  0x67   :  { %103 = vst.msk [vmem:[%s222_s1 + $0x5] sm:$0x1] %vm7_vm0, %v35_v16  }
  0x6e   :  { %v41_v17 = vpop.permute.xlu2 %40  }
  0x6f   :  { %104 = vst.msk [vmem:[%s222_s1 + $0x6] sm:$0x1] %vm7_vm0, %v41_v17  }
  0x76   :  { %v59_v18 = vpop.permute.xlu2 %58  }
  0x77   :  { %107 = vst.msk [vmem:[%s222_s1 + $0x9] sm:$0x1] %vm7_vm0, %v59_v18  }
  0x7c   :  { %v23_v19 = vpop.permute.xlu1 %22  }
  0x7d   :  { %v11_v20 = vpop.permute.xlu0 %10   ;;  %101 = vst.msk [vmem:[%s222_s1 + $0x3] sm:$0x1] %vm7_vm0, %v23_v19  }
  0x7e   :  { %99 = vst.msk [vmem:[%s222_s1 + $0x1] sm:$0x1] %vm7_vm0, %v11_v20   ;;  %v77_v22 = vpop.permute.xlu2 %76  }
  0x7f   :  { %110 = vst.msk [vmem:[%s222_s1 + $0xc] sm:$0x1] %vm7_vm0, %v77_v22  }
  0x84   :  { %v29_v23 = vpop.permute.xlu1 %28  }
  0x85   :  { %v17_v24 = vpop.permute.xlu0 %16   ;;  %102 = vst.msk [vmem:[%s222_s1 + $0x4] sm:$0x1] %vm7_vm0, %v29_v23  }
  0x86   :  { %100 = vst.msk [vmem:[%s222_s1 + $0x2] sm:$0x1] %vm7_vm0, %v17_v24   ;;  %v95_v25 = vpop.permute.xlu2 %94  }
  0x87   :  { %113 = vst.msk [vmem:[%s222_s1 + $0xf] sm:$0x1] %vm7_vm0, %v95_v25  }
  0x8c   :  { %v53_v26 = vpop.permute.xlu1 %52  }
  0x8d   :  { %v47_v27 = vpop.permute.xlu0 %46   ;;  %106 = vst.msk [vmem:[%s222_s1 + $0x8] sm:$0x1] %vm7_vm0, %v53_v26  }
  0x8e   :  { %105 = vst.msk [vmem:[%s222_s1 + $0x7] sm:$0x1] %vm7_vm0, %v47_v27  }
  0x94   :  { %v71_v28 = vpop.permute.xlu1 %70  }
  0x95   :  { %v65_v29 = vpop.permute.xlu0 %64   ;;  %109 = vst.msk [vmem:[%s222_s1 + $0xb] sm:$0x1] %vm7_vm0, %v71_v28  }
  0x96   :  { %108 = vst.msk [vmem:[%s222_s1 + $0xa] sm:$0x1] %vm7_vm0, %v65_v29  }
  0x9c   :  { %v89_v30 = vpop.permute.xlu1 %88  }
  0x9d   :  { %v83_v31 = vpop.permute.xlu0 %82   ;;  %112 = vst.msk [vmem:[%s222_s1 + $0xe] sm:$0x1] %vm7_vm0, %v89_v30  }
  0x9e   :  { %111 = vst.msk [vmem:[%s222_s1 + $0xd] sm:$0x1] %vm7_vm0, %v83_v31  }

// kernel: mul.499
= control target key start
LH: loop header
LB: loop body
LE: loop exit
PB: predicated region body
PF: predicated region fallthrough
CT: control target
= control target key end

     0   :  { %s72_s8 = smov 116   ;;  %s73_s9 = smov 108   ;;  %vm7_vm0 = vcmask 31744   ;;  %s105_s0 = inlined_call_operand.vmem [shape: f32[32], index: 0, kind: input, shape index: {}]   ;;  %s106_s1 = inlined_call_operand.vmem [shape: f32[2,4,4], index: 1, kind: output, shape index: {}]  }
   0x1   :  { %v4_v0 = vld [vmem:[%s105_s0] sm:$0x1]  ;;  %s71_s0 = smov 124   ;;  %s74_s10 = smov 120  }
   0x2   :  { %5 = vst [vmem:[#allocation1] sm:$0x1] %v4_v0  ;;  %s75_s11 = smov 112   ;;  %s76_s12 = smov 104  }
   0x3   :  { %s77_s13 = smov 100  }
   0x9   :  { %v9_v1 = vld [vmem:[#allocation1] sm:$0x1]  }
   0xa   :  { %v21_v2 = vld [vmem:[#allocation1] sm:$0x1]   ;;  %10 = vrot.lane.b32.xlu0 %v9_v1, %s71_s0 }
   0xb   :  { %22 = vrot.lane.b32.xlu1 %v21_v2, %s72_s8  ;;  %v33_v3 = vld [vmem:[#allocation1] sm:$0x1]  }
   0xc   :  { %34 = vrot.lane.b32.xlu2 %v33_v3, %s73_s9  ;;  %v15_v4 = vld [vmem:[#allocation1] sm:$0x1]  }
   0xd   :  { %v27_v5 = vld [vmem:[#allocation1] sm:$0x1]  }
   0xe   :  { %v39_v6 = vld [vmem:[#allocation1] sm:$0x1]  }
   0xf   :  { %v45_v7 = vld [vmem:[#allocation1] sm:$0x1]  }
  0x10   :  { %v6_v8 = vld [vmem:[#allocation1] sm:$0x1]  }
  0x11   :  { %8 = vst.msk [vmem:[#allocation0] sm:$0x1] %vm7_vm0, %v6_v8  }
  0x12   :  { %16 = vrot.lane.b32.xlu0 %v15_v4, %s74_s10 }
  0x13   :  { %28 = vrot.lane.b32.xlu1 %v27_v5, %s75_s11 }
  0x14   :  { %40 = vrot.lane.b32.xlu2 %v39_v6, %s76_s12 }
  0x1a   :  { %46 = vrot.lane.b32.xlu0 %v45_v7, %s77_s13 }
  0x66   :  { %v35_v9 = vpop.permute.xlu2 %34  }
  0x67   :  { %38 = vst.msk [vmem:[#allocation0 + $0x9] sm:$0x1] %vm7_vm0, %v35_v9  }
  0x6e   :  { %v41_v10 = vpop.permute.xlu2 %40  }
  0x6f   :  { %44 = vst.msk [vmem:[#allocation0 + $0xa] sm:$0x1] %vm7_vm0, %v41_v10  }
  0x7c   :  { %v11_v11 = vpop.permute.xlu0 %10  }
  0x7d   :  { %v23_v12 = vpop.permute.xlu1 %22   ;;  %14 = vst.msk [vmem:[#allocation0 + $0x1] sm:$0x1] %vm7_vm0, %v11_v11  }
  0x7e   :  { %26 = vst.msk [vmem:[#allocation0 + $0x3] sm:$0x1] %vm7_vm0, %v23_v12  }
  0x84   :  { %v17_v13 = vpop.permute.xlu0 %16  }
  0x85   :  { %v29_v14 = vpop.permute.xlu1 %28   ;;  %20 = vst.msk [vmem:[#allocation0 + $0x2] sm:$0x1] %vm7_vm0, %v17_v13  }
  0x86   :  { %32 = vst.msk [vmem:[#allocation0 + $0x8] sm:$0x1] %vm7_vm0, %v29_v14  }
  0x8c   :  { %v53_v15 = vld [vmem:[#allocation0] sm:$0xf]  ;;  %v47_v16 = vpop.permute.xlu0 %46  }
  0x8d   :  { %56 = vst [vmem:[%s106_s1] sm:$0xf] %v53_v15 }
  0x8e   :  { %50 = vst.msk [vmem:[#allocation0 + $0xb] sm:$0x1] %vm7_vm0, %v47_v16  }
  0x95   :  { %v58_v17 = vld [vmem:[#allocation0 + $0x8] sm:$0xf] }
  0x96   :  { %63 = vst [vmem:[%s106_s1 + $0x4] sm:$0xf] %v58_v17 }

// kernel: mul.515
= control target key start
LH: loop header
LB: loop body
LE: loop exit
PB: predicated region body
PF: predicated region fallthrough
CT: control target
= control target key end

     0   :  { %s44_s8 = smov 122   ;;  %s45_s9 = smov 124   ;;  %vm7_vm0 = vcmask 15360   ;;  %s65_s0 = inlined_call_operand.vmem [shape: f32[8], index: 0, kind: input, shape index: {}]   ;;  %s66_s1 = inlined_call_operand.vmem [shape: f32[2,2,2], index: 1, kind: output, shape index: {}]  }
   0x1   :  { %v4_v0 = vld [vmem:[%s65_s0] sm:$0x1]  ;;  %s43_s0 = smov 126  }
   0x2   :  { %5 = vst [vmem:[#allocation1] sm:$0x1] %v4_v0 }
   0x9   :  { %v9_v1 = vld [vmem:[#allocation1] sm:$0x1]  }
   0xa   :  { %v21_v2 = vld [vmem:[#allocation1] sm:$0x1]   ;;  %10 = vrot.lane.b32.xlu0 %v9_v1, %s43_s0 }
   0xb   :  { %22 = vrot.lane.b32.xlu1 %v21_v2, %s44_s8  ;;  %v15_v3 = vld [vmem:[#allocation1] sm:$0x1]  }
   0xc   :  { %v6_v4 = vld [vmem:[#allocation1] sm:$0x1]  }
   0xd   :  { %8 = vst.msk [vmem:[#allocation0] sm:$0x1] %vm7_vm0, %v6_v4  }
  0x12   :  { %16 = vrot.lane.b32.xlu0 %v15_v3, %s45_s9 }
  0x7c   :  { %v11_v5 = vpop.permute.xlu0 %10  }
  0x7d   :  { %v23_v6 = vpop.permute.xlu1 %22   ;;  %14 = vst.msk [vmem:[#allocation0 + $0x1] sm:$0x1] %vm7_vm0, %v11_v5  }
  0x7e   :  { %26 = vst.msk [vmem:[#allocation0 + $0x9] sm:$0x1] %vm7_vm0, %v23_v6  }
  0x84   :  { %v29_v7 = vld [vmem:[#allocation0] sm:$0x3]  ;;  %v17_v8 = vpop.permute.xlu0 %16  }
  0x85   :  { %32 = vst [vmem:[%s66_s1] sm:$0x3] %v29_v7 }
  0x86   :  { %20 = vst.msk [vmem:[#allocation0 + $0x8] sm:$0x1] %vm7_vm0, %v17_v8  }
  0x8d   :  { %v34_v9 = vld [vmem:[#allocation0 + $0x8] sm:$0x3] }
  0x8e   :  { %39 = vst [vmem:[%s66_s1 + $0x2] sm:$0x3] %v34_v9 }

// kernel: mul.558
= control target key start
LH: loop header
LB: loop body
LE: loop exit
PB: predicated region body
PF: predicated region fallthrough
CT: control target
= control target key end

     0   :  { %s196_s0 = inlined_call_operand.vmem [shape: f32[2,4,4,32], index: 0, kind: input, shape index: {}]   ;;  %s197_s1 = inlined_call_operand.vmem [shape: f32[2,4,4,32], index: 1, kind: input, shape index: {}]   ;;  %s198_s2 = inlined_call_operand.vmem [shape: bf16[2,4,4,32], index: 2, kind: output, shape index: {}]  }
   0x1   :  { %v3_v0 = vld [vmem:[%s196_s0] sm:$0xf]  ;;  %v88_v2 = vld [vmem:[%s196_s0 + $0x10] sm:$0xf]  ;;  %v91_v5 = vld [vmem:[%s196_s0 + $0x4] sm:$0xf] }
   0x2   :  { %v4_v1 = vld [vmem:[%s197_s1] sm:$0xf]  ;;  %v89_v4 = vld [vmem:[%s197_s1 + $0x10] sm:$0xf]  ;;  %v92_v6 = vld [vmem:[%s197_s1 + $0x4] sm:$0xf] }
   0x3   :  { %v7_v3 = vmul.f32 %v4_v1, %v3_v0  ;;  %v17_v7 = vmul.f32 %v89_v4, %v88_v2  ;;  %v28_v8 = vmul.f32 %v92_v6, %v91_v5  ;;  %v94_v9 = vld [vmem:[%s196_s0 + $0x14] sm:$0xf]  ;;  %v97_v11 = vld [vmem:[%s196_s0 + $0x8] sm:$0xf]  ;;  %v100_v15 = vld [vmem:[%s196_s0 + $0x18] sm:$0xf] }
   0x4   :  { %v95_v10 = vld [vmem:[%s197_s1 + $0x14] sm:$0xf]  ;;  %v98_v14 = vld [vmem:[%s197_s1 + $0x8] sm:$0xf]  ;;  %v101_v19 = vld [vmem:[%s197_s1 + $0x18] sm:$0xf] }
   0x5   :  { %v9_v12 = vpack.c.bf16 0.0, %v7_v3  ;;  %v39_v13 = vmul.f32 %v95_v10, %v94_v9  ;;  %v20_v16 = vpack.c.bf16 0.0, %v17_v7  ;;  %v31_v17 = vpack.c.bf16 0.0, %v28_v8  ;;  %v103_v20 = vld [vmem:[%s196_s0 + $0xc] sm:$0xf] }
   0x6   :  { %v50_v18 = vmul.f32 %v98_v14, %v97_v11  ;;  %v61_v22 = vmul.f32 %v101_v19, %v100_v15  ;;  %v104_v23 = vld [vmem:[%s197_s1 + $0xc] sm:$0xf]  ;;  %v106_v24 = vld [vmem:[%s196_s0 + $0x1c] sm:$0xf] }
   0x7   :  { %10 = vst [vmem:[%s198_s2] sm:$0x3] %v9_v12  ;;  %v42_v21 = vpack.c.bf16 0.0, %v39_v13  ;;  %v72_v26 = vmul.f32 %v104_v23, %v103_v20  ;;  %v107_v27 = vld [vmem:[%s197_s1 + $0x1c] sm:$0xf] }
   0x8   :  { %90 = vst [vmem:[%s198_s2 + $0x8] sm:$0x3] %v20_v16  ;;  %v53_v25 = vpack.c.bf16 0.0, %v50_v18  ;;  %v64_v28 = vpack.c.bf16 0.0, %v61_v22  ;;  %v83_v29 = vmul.f32 %v107_v27, %v106_v24 }
   0x9   :  { %93 = vst [vmem:[%s198_s2 + $0x2] sm:$0x3] %v31_v17  ;;  %v75_v30 = vpack.c.bf16 0.0, %v72_v26 }
   0xa   :  { %96 = vst [vmem:[%s198_s2 + $0xa] sm:$0x3] %v42_v21  ;;  %v86_v31 = vpack.c.bf16 0.0, %v83_v29 }
   0xb   :  { %99 = vst [vmem:[%s198_s2 + $0x4] sm:$0x3] %v53_v25 }
   0xc   :  { %102 = vst [vmem:[%s198_s2 + $0xc] sm:$0x3] %v64_v28 }
   0xd   :  { %105 = vst [vmem:[%s198_s2 + $0x6] sm:$0x3] %v75_v30 }
   0xe   :  { %108 = vst [vmem:[%s198_s2 + $0xe] sm:$0x3] %v86_v31 }

// kernel: squeeze.147
= control target key start
LH: loop header
LB: loop body
LE: loop exit
PB: predicated region body
PF: predicated region fallthrough
CT: control target
= control target key end

     0   :  { %s146_s8 = smov 120   ;;  %s147_s9 = smov 88   ;;  %vm18_vm0 = vcmask 64512   ;;  %s192_s0 = inlined_call_operand.vmem [shape: bf16[128], index: 0, kind: input, shape index: {}]   ;;  %s193_s1 = inlined_call_operand.vmem [shape: bf16[2,8,8,1], index: 1, kind: output, shape index: {}]  }
   0x1   :  { %v13_v0 = vld [vmem:[%s192_s0] sm:$0x1]  ;;  %s145_s0 = smov 104   ;;  %s148_s10 = smov 96  }
   0x2   :  { %v14_v1 = vunpack.c.l.bf16 %v13_v0  ;;  %s149_s11 = smov 112   ;;  %s150_s12 = smov 80  }
   0x3   :  { %s151_s13 = smov 64   ;;  %s152_s14 = smov 72  }
   0x4   :  { %16 = vst [vmem:[#allocation1] sm:$0x3] %v14_v1  ;;  %s153_s15 = smov 56   ;;  %s154_s16 = smov 40  }
   0x5   :  { %s155_s17 = smov 48   ;;  %s156_s18 = smov 32  }
   0x6   :  { %s157_s19 = smov 16   ;;  %s158_s20 = smov 24  }
   0x7   :  { %s159_s21 = smov 8  }
   0xb   :  { %v32_v2 = vld [vmem:[#allocation1] sm:$0x1]  }
   0xc   :  { %v20_v3 = vld [vmem:[#allocation1] sm:$0x1]   ;;  %33 = vrot.lane.b32.xlu1 %v32_v2, %s145_s0 }
   0xd   :  { %21 = vrot.lane.b32.xlu0 %v20_v3, %s146_s8  ;;  %v44_v4 = vld [vmem:[#allocation1] sm:$0x1]  }
   0xe   :  { %45 = vrot.lane.b32.xlu2 %v44_v4, %s147_s9  ;;  %v38_v5 = vld [vmem:[#allocation1] sm:$0x1]  }
   0xf   :  { %v26_v6 = vld [vmem:[#allocation1] sm:$0x1]  }
  0x10   :  { %v50_v7 = vld [vmem:[#allocation1] sm:$0x1]  }
  0x11   :  { %v62_v8 = vld [vmem:[#allocation1] sm:$0x1]  }
  0x12   :  { %v56_v9 = vld [vmem:[#allocation1] sm:$0x1]  }
  0x13   :  { %v68_v10 = vld [vmem:[#allocation1] sm:$0x1]  }
  0x14   :  { %39 = vrot.lane.b32.xlu1 %v38_v5, %s148_s10  ;;  %v80_v11 = vld [vmem:[#allocation1] sm:$0x1]  }
  0x15   :  { %27 = vrot.lane.b32.xlu0 %v26_v6, %s149_s11  ;;  %v74_v12 = vld [vmem:[#allocation1] sm:$0x1]  }
  0x16   :  { %51 = vrot.lane.b32.xlu2 %v50_v7, %s150_s12  ;;  %v86_v13 = vld [vmem:[#allocation1] sm:$0x1]  }
  0x17   :  { %v98_v14 = vld [vmem:[#allocation1] sm:$0x1]  }
  0x18   :  { %v92_v15 = vld [vmem:[#allocation1] sm:$0x1]  }
  0x19   :  { %v104_v16 = vld [vmem:[#allocation1] sm:$0x1]  }
  0x1a   :  { %v17_v17 = vld [vmem:[#allocation1] sm:$0x1]  }
  0x1b   :  { %19 = vst.msk [vmem:[#allocation0] sm:$0x1] %vm18_vm0, %v17_v17  }
  0x1c   :  { %63 = vrot.lane.b32.xlu1 %v62_v8, %s151_s13 }
  0x1d   :  { %57 = vrot.lane.b32.xlu0 %v56_v9, %s152_s14 }
  0x1e   :  { %69 = vrot.lane.b32.xlu2 %v68_v10, %s153_s15 }
  0x24   :  { %81 = vrot.lane.b32.xlu1 %v80_v11, %s154_s16 }
  0x25   :  { %75 = vrot.lane.b32.xlu0 %v74_v12, %s155_s17 }
  0x26   :  { %87 = vrot.lane.b32.xlu2 %v86_v13, %s156_s18 }
  0x2c   :  { %99 = vrot.lane.b32.xlu1 %v98_v14, %s157_s19 }
  0x2d   :  { %93 = vrot.lane.b32.xlu0 %v92_v15, %s158_s20 }
  0x2e   :  { %105 = vrot.lane.b32.xlu2 %v104_v16, %s159_s21 }
  0x68   :  { %v46_v18 = vpop.permute.xlu2 %45  }
  0x69   :  { %49 = vst.msk [vmem:[#allocation0 + $0x5] sm:$0x1] %vm18_vm0, %v46_v18  }
  0x70   :  { %v52_v19 = vpop.permute.xlu2 %51  }
  0x71   :  { %55 = vst.msk [vmem:[#allocation0 + $0x6] sm:$0x1] %vm18_vm0, %v52_v19  }
  0x78   :  { %v70_v20 = vpop.permute.xlu2 %69  }
  0x79   :  { %73 = vst.msk [vmem:[#allocation0 + $0x9] sm:$0x1] %vm18_vm0, %v70_v20  }
  0x7e   :  { %v34_v21 = vpop.permute.xlu1 %33  }
  0x7f   :  { %v22_v22 = vpop.permute.xlu0 %21   ;;  %37 = vst.msk [vmem:[#allocation0 + $0x3] sm:$0x1] %vm18_vm0, %v34_v21  }
  0x80   :  { %25 = vst.msk [vmem:[#allocation0 + $0x1] sm:$0x1] %vm18_vm0, %v22_v22   ;;  %v88_v23 = vpop.permute.xlu2 %87  }
  0x81   :  { %91 = vst.msk [vmem:[#allocation0 + $0xc] sm:$0x1] %vm18_vm0, %v88_v23  }
  0x86   :  { %v40_v24 = vpop.permute.xlu1 %39  }
  0x87   :  { %v28_v25 = vpop.permute.xlu0 %27   ;;  %43 = vst.msk [vmem:[#allocation0 + $0x4] sm:$0x1] %vm18_vm0, %v40_v24  }
  0x88   :  { %31 = vst.msk [vmem:[#allocation0 + $0x2] sm:$0x1] %vm18_vm0, %v28_v25   ;;  %v106_v26 = vpop.permute.xlu2 %105  }
  0x89   :  { %109 = vst.msk [vmem:[#allocation0 + $0xf] sm:$0x1] %vm18_vm0, %v106_v26  }
  0x8e   :  { %v64_v27 = vpop.permute.xlu1 %63  }
  0x8f   :  { %v58_v28 = vpop.permute.xlu0 %57   ;;  %67 = vst.msk [vmem:[#allocation0 + $0x8] sm:$0x1] %vm18_vm0, %v64_v27  }
  0x90   :  { %61 = vst.msk [vmem:[#allocation0 + $0x7] sm:$0x1] %vm18_vm0, %v58_v28  }
  0x96   :  { %v82_v29 = vpop.permute.xlu1 %81  }
  0x97   :  { %v76_v30 = vpop.permute.xlu0 %75   ;;  %85 = vst.msk [vmem:[#allocation0 + $0xb] sm:$0x1] %vm18_vm0, %v82_v29   ;;  %v112_v33 = vld [vmem:[#allocation0] sm:$0xff] }
  0x98   :  { %79 = vst.msk [vmem:[#allocation0 + $0xa] sm:$0x1] %vm18_vm0, %v76_v30  }
  0x9e   :  { %v100_v31 = vpop.permute.xlu1 %99  }
  0x9f   :  { %v94_v32 = vpop.permute.xlu0 %93   ;;  %103 = vst.msk [vmem:[#allocation0 + $0xe] sm:$0x1] %vm18_vm0, %v100_v31  }
  0xa0   :  { %97 = vst.msk [vmem:[#allocation0 + $0xd] sm:$0x1] %vm18_vm0, %v94_v32  }
  0xa7   :  { %v118_v34 = vld [vmem:[#allocation0 + $0x8] sm:$0xff] }
  0xa8   :  { %v128_v35 = vpack.c.bf16 %v118_v34, %v112_v33 }
  0xaa   :  { %129 = vst [vmem:[%s193_s1] sm:$0xff] %v128_v35  }

// kernel: squeeze.148
= control target key start
LH: loop header
LB: loop body
LE: loop exit
PB: predicated region body
PF: predicated region fallthrough
CT: control target
= control target key end

     0   :  { %s130_s8 = smov 120   ;;  %s131_s9 = smov 88   ;;  %vm7_vm0 = vcmask 64512   ;;  %s221_s0 = inlined_call_operand.vmem [shape: f32[128], index: 0, kind: input, shape index: {}]   ;;  %s222_s1 = inlined_call_operand.vmem [shape: f32[2,8,8,1], index: 1, kind: output, shape index: {}]  }
   0x1   :  { %v4_v0 = vld [vmem:[%s221_s0] sm:$0x1]  ;;  %s129_s0 = smov 104   ;;  %s132_s10 = smov 96  }
   0x2   :  { %5 = vst [vmem:[#allocation0] sm:$0x1] %v4_v0  ;;  %s133_s11 = smov 112   ;;  %s134_s12 = smov 80  }
   0x3   :  { %s135_s13 = smov 64   ;;  %s136_s14 = smov 72  }
   0x4   :  { %s137_s15 = smov 56   ;;  %s138_s16 = smov 40  }
   0x5   :  { %s139_s17 = smov 48   ;;  %s140_s18 = smov 32  }
   0x6   :  { %s141_s19 = smov 16   ;;  %s142_s20 = smov 24  }
   0x7   :  { %s143_s21 = smov 8  }
   0x9   :  { %v21_v1 = vld [vmem:[#allocation0] sm:$0x1]  }
   0xa   :  { %v9_v2 = vld [vmem:[#allocation0] sm:$0x1]   ;;  %22 = vrot.lane.b32.xlu1 %v21_v1, %s129_s0 }
   0xb   :  { %10 = vrot.lane.b32.xlu0 %v9_v2, %s130_s8  ;;  %v33_v3 = vld [vmem:[#allocation0] sm:$0x1]  }
   0xc   :  { %34 = vrot.lane.b32.xlu2 %v33_v3, %s131_s9  ;;  %v27_v4 = vld [vmem:[#allocation0] sm:$0x1]  }
   0xd   :  { %v15_v5 = vld [vmem:[#allocation0] sm:$0x1]  }
   0xe   :  { %v39_v6 = vld [vmem:[#allocation0] sm:$0x1]  }
   0xf   :  { %v51_v7 = vld [vmem:[#allocation0] sm:$0x1]  }
  0x10   :  { %v45_v8 = vld [vmem:[#allocation0] sm:$0x1]  }
  0x11   :  { %v57_v9 = vld [vmem:[#allocation0] sm:$0x1]  }
  0x12   :  { %28 = vrot.lane.b32.xlu1 %v27_v4, %s132_s10  ;;  %v69_v10 = vld [vmem:[#allocation0] sm:$0x1]  }
  0x13   :  { %16 = vrot.lane.b32.xlu0 %v15_v5, %s133_s11  ;;  %v63_v11 = vld [vmem:[#allocation0] sm:$0x1]  }
  0x14   :  { %40 = vrot.lane.b32.xlu2 %v39_v6, %s134_s12  ;;  %v75_v12 = vld [vmem:[#allocation0] sm:$0x1]  }
  0x15   :  { %v87_v13 = vld [vmem:[#allocation0] sm:$0x1]  }
  0x16   :  { %v81_v14 = vld [vmem:[#allocation0] sm:$0x1]  }
  0x17   :  { %v93_v15 = vld [vmem:[#allocation0] sm:$0x1]  }
  0x18   :  { %v6_v21 = vld [vmem:[#allocation0] sm:$0x1]  }
  0x19   :  { %8 = vst.msk [vmem:[%s222_s1] sm:$0x1] %vm7_vm0, %v6_v21  }
  0x1a   :  { %52 = vrot.lane.b32.xlu1 %v51_v7, %s135_s13 }
  0x1b   :  { %46 = vrot.lane.b32.xlu0 %v45_v8, %s136_s14 }
  0x1c   :  { %58 = vrot.lane.b32.xlu2 %v57_v9, %s137_s15 }
  0x22   :  { %70 = vrot.lane.b32.xlu1 %v69_v10, %s138_s16 }
  0x23   :  { %64 = vrot.lane.b32.xlu0 %v63_v11, %s139_s17 }
  0x24   :  { %76 = vrot.lane.b32.xlu2 %v75_v12, %s140_s18 }
  0x2a   :  { %88 = vrot.lane.b32.xlu1 %v87_v13, %s141_s19 }
  0x2b   :  { %82 = vrot.lane.b32.xlu0 %v81_v14, %s142_s20 }
  0x2c   :  { %94 = vrot.lane.b32.xlu2 %v93_v15, %s143_s21 }
  0x66   :  { %v35_v16 = vpop.permute.xlu2 %34  }
  0x67   :  { %103 = vst.msk [vmem:[%s222_s1 + $0x5] sm:$0x1] %vm7_vm0, %v35_v16  }
  0x6e   :  { %v41_v17 = vpop.permute.xlu2 %40  }
  0x6f   :  { %104 = vst.msk [vmem:[%s222_s1 + $0x6] sm:$0x1] %vm7_vm0, %v41_v17  }
  0x76   :  { %v59_v18 = vpop.permute.xlu2 %58  }
  0x77   :  { %107 = vst.msk [vmem:[%s222_s1 + $0x9] sm:$0x1] %vm7_vm0, %v59_v18  }
  0x7c   :  { %v23_v19 = vpop.permute.xlu1 %22  }
  0x7d   :  { %v11_v20 = vpop.permute.xlu0 %10   ;;  %101 = vst.msk [vmem:[%s222_s1 + $0x3] sm:$0x1] %vm7_vm0, %v23_v19  }
  0x7e   :  { %99 = vst.msk [vmem:[%s222_s1 + $0x1] sm:$0x1] %vm7_vm0, %v11_v20   ;;  %v77_v22 = vpop.permute.xlu2 %76  }
  0x7f   :  { %110 = vst.msk [vmem:[%s222_s1 + $0xc] sm:$0x1] %vm7_vm0, %v77_v22  }
  0x84   :  { %v29_v23 = vpop.permute.xlu1 %28  }
  0x85   :  { %v17_v24 = vpop.permute.xlu0 %16   ;;  %102 = vst.msk [vmem:[%s222_s1 + $0x4] sm:$0x1] %vm7_vm0, %v29_v23  }
  0x86   :  { %100 = vst.msk [vmem:[%s222_s1 + $0x2] sm:$0x1] %vm7_vm0, %v17_v24   ;;  %v95_v25 = vpop.permute.xlu2 %94  }
  0x87   :  { %113 = vst.msk [vmem:[%s222_s1 + $0xf] sm:$0x1] %vm7_vm0, %v95_v25  }
  0x8c   :  { %v53_v26 = vpop.permute.xlu1 %52  }
  0x8d   :  { %v47_v27 = vpop.permute.xlu0 %46   ;;  %106 = vst.msk [vmem:[%s222_s1 + $0x8] sm:$0x1] %vm7_vm0, %v53_v26  }
  0x8e   :  { %105 = vst.msk [vmem:[%s222_s1 + $0x7] sm:$0x1] %vm7_vm0, %v47_v27  }
  0x94   :  { %v71_v28 = vpop.permute.xlu1 %70  }
  0x95   :  { %v65_v29 = vpop.permute.xlu0 %64   ;;  %109 = vst.msk [vmem:[%s222_s1 + $0xb] sm:$0x1] %vm7_vm0, %v71_v28  }
  0x96   :  { %108 = vst.msk [vmem:[%s222_s1 + $0xa] sm:$0x1] %vm7_vm0, %v65_v29  }
  0x9c   :  { %v89_v30 = vpop.permute.xlu1 %88  }
  0x9d   :  { %v83_v31 = vpop.permute.xlu0 %82   ;;  %112 = vst.msk [vmem:[%s222_s1 + $0xe] sm:$0x1] %vm7_vm0, %v89_v30  }
  0x9e   :  { %111 = vst.msk [vmem:[%s222_s1 + $0xd] sm:$0x1] %vm7_vm0, %v83_v31  }

</bundles_post_ra>
